<compile_context>
chip_gen: v5e
topology: v5e:2x2
jax: 0.10.0
libtpu: 0.0.40
codegen_flags: <defaults>
</compile_context>

<pallas_src>
import jax
import jax.numpy as jnp
from jax.experimental import pallas as pl
from jax.experimental.pallas import tpu as pltpu

_NEG_FILL = -1e30      # additive mask value (finite, bf16-representable: avoids inf-inf NaNs)
_MASK_THRESH = -1e29   # entries below this are treated as "no edge"


def attentive_gru2_kernel(logits_ref, hv_ref, gh_ref, h_ref, wih_ref, bih_ref, out_ref):
    f_pad = out_ref.shape[1]                       # padded node-feature width (per-gate block)

    # ---- masked edge_softmax numerator over incoming edges (src = lane axis) ----
    ml = logits_ref[...].astype(jnp.float32)       # bf16 stream -> f32 math
    valid = ml > _MASK_THRESH                      # single compare; keeps isolated rows at a == 0
    rowmax = jnp.max(ml, axis=-1, keepdims=True)
    p = jnp.where(valid, jnp.exp(ml - rowmax), 0.0)
    denom = jnp.sum(p, axis=-1, keepdims=True)

    # ---- aggregate FIRST on the MXU (bf16 in, f32 acc), normalize the small result ----
    c_raw = jnp.dot(p.astype(jnp.bfloat16), hv_ref[...],
                    preferred_element_type=jnp.float32)        # (tile_n, H_pad)
    # denom >= 1 for any row with at least one edge; the floor only affects fully-masked
    # (padded / isolated) rows, which end up with c == 0 (matching DGL's sum-reducer default).
    inv = pl.reciprocal(jnp.maximum(denom, 1.0), approx=True)
    c = c_raw * inv

    # ---- context = elu(c), overflow-safe (exp argument clamped to <= 0) ----
    context = jnp.where(c > 0, c, jnp.exp(jnp.minimum(c, 0.0)) - 1.0)

    # ---- GRUCell(input=context, hidden=node_feats[tile]) ----
    gi = jnp.dot(context, wih_ref[...], preferred_element_type=jnp.float32) + bih_ref[...]
    gh = gh_ref[...]                               # precomputed h @ W_hh + b_hh (this tile)
    h = h_ref[...]                                 # hidden-state rows of this tile

    # per-gate blocks are padded to f_pad (=128) lanes -> all slices lane-aligned
    i_r = gi[:, 0 * f_pad:1 * f_pad]
    i_z = gi[:, 1 * f_pad:2 * f_pad]
    i_n = gi[:, 2 * f_pad:3 * f_pad]
    h_r = gh[:, 0 * f_pad:1 * f_pad]
    h_z = gh[:, 1 * f_pad:2 * f_pad]
    h_n = gh[:, 2 * f_pad:3 * f_pad]

    r = jax.nn.sigmoid(i_r + h_r)
    z = jax.nn.sigmoid(i_z + h_z)
    n = jnp.tanh(i_n + r * h_n)
    new_h = (1.0 - z) * n + z * h

    out_ref[...] = jnp.maximum(new_h, 0.0)         # relu (lane-dense unmasked store)


def _round_up(x, m):
    return ((x + m - 1) // m) * m


def _vmem_budget_bytes():
    """Generation-aware scoped-VMEM budget (tighter on v7x's 64 MiB, looser on 128 MiB parts)."""
    try:
        cap = pltpu.get_tpu_info().vmem_capacity_bytes
    except Exception:
        cap = 64 * 1024 * 1024
    return 48 * 1024 * 1024 if cap <= 64 * 1024 * 1024 else 64 * 1024 * 1024


def _pick_tile(N, F_pad, H_pad, vmem_limit):
    """Largest dst tile whose buffers fit comfortably inside the VMEM budget."""
    n_min = _round_up(N, 128)
    for tile in (512, 256, 128):
        if tile > n_min:
            continue
        n_pad = _round_up(N, tile)
        resident = (n_pad * H_pad * 2            # hv (bf16, single-buffered)
                    + H_pad * 3 * F_pad * 4      # w_ih
                    + 3 * F_pad * 4)             # b_ih
        streamed = 2 * (tile * n_pad * 2         # bf16 logits tile (double-buffered)
                        + tile * 3 * F_pad * 4   # gh tile
                        + tile * F_pad * 4       # h tile
                        + tile * F_pad * 4)      # out tile
        if resident + streamed <= int(vmem_limit * 0.8):
            return tile
    return 128


def attentive_gru2(edge_logits, adj_mask, node_feats, params, *, tile_n=None):
    """Dense-graph AttentiveGRU2 forward (eval mode)."""
    f32, bf16 = jnp.float32, jnp.bfloat16
    N, F = node_feats.shape
    H = params["w_proj"].shape[1]

    F_pad = _round_up(F, 128)
    H_pad = _round_up(H, 128)

    vmem_limit = _vmem_budget_bytes()
    if tile_n is None:
        tile_n = _pick_tile(N, F_pad, H_pad, vmem_limit)
    N_pad = _round_up(N, tile_n)
    G = N_pad // tile_n

    # ---- host prep: fold mask, cast to bf16, pad -- one fused expression, one buffer ----
    ml = jnp.pad(
        jnp.where(adj_mask > 0, edge_logits, _NEG_FILL).astype(bf16),
        ((0, N_pad - N), (0, N_pad - N)), constant_values=_NEG_FILL)

    feats = jnp.pad(node_feats.astype(f32), ((0, N_pad - N), (0, F_pad - F)))

    def pad_gate_w(w, rows, rows_pad):
        # (rows, 3F) -> (rows_pad, 3*F_pad), each gate block padded independently
        out = jnp.zeros((rows_pad, 3 * F_pad), f32)
        for g in range(3):
            out = out.at[:rows, g * F_pad:g * F_pad + F].set(w[:, g * F:(g + 1) * F])
        return out

    def pad_gate_b(b):
        out = jnp.zeros((1, 3 * F_pad), f32)
        for g in range(3):
            out = out.at[:, g * F_pad:g * F_pad + F].set(b[:, g * F:(g + 1) * F])
        return out

    w_proj = jnp.zeros((F_pad, H_pad), f32).at[:F, :H].set(params["w_proj"])
    b_proj = jnp.zeros((1, H_pad), f32).at[:, :H].set(params["b_proj"])
    w_hh = pad_gate_w(params["w_hh"], F, F_pad)
    b_hh = pad_gate_b(params["b_hh"])
    w_ih = pad_gate_w(params["w_ih"], H, H_pad)
    b_ih = pad_gate_b(params["b_ih"])

    # ---- hoisted h-projections (bf16 MXU inputs, f32 accumulation) ----
    feats_bf = feats.astype(bf16)
    hv = (jnp.dot(feats_bf, w_proj.astype(bf16), preferred_element_type=f32)
          + b_proj).astype(bf16)                                    # (N_pad, H_pad) bf16
    gh = jnp.dot(feats_bf, w_hh.astype(bf16), preferred_element_type=f32) + b_hh  # (N_pad, 3*F_pad) f32

    out_padded = pl.pallas_call(
        attentive_gru2_kernel,
        out_shape=jax.ShapeDtypeStruct((N_pad, F_pad), f32),
        grid_spec=pltpu.PrefetchScalarGridSpec(
            num_scalar_prefetch=0,
            grid=(G,),
            in_specs=[
                # streamed per dst tile (default double-buffered)
                pl.BlockSpec((tile_n, N_pad), lambda i: (i, 0)),        # bf16 masked logits
                # grid-invariant, single-buffered
                pl.BlockSpec((N_pad, H_pad), lambda i: (0, 0),
                             pipeline_mode=pl.Buffered(1)),             # hv (bf16, resident)
                pl.BlockSpec((tile_n, 3 * F_pad), lambda i: (i, 0)),    # gh tile
                pl.BlockSpec((tile_n, F_pad), lambda i: (i, 0)),        # h tile
                pl.BlockSpec((H_pad, 3 * F_pad), lambda i: (0, 0),
                             pipeline_mode=pl.Buffered(1)),             # w_ih
                pl.BlockSpec((1, 3 * F_pad), lambda i: (0, 0),
                             pipeline_mode=pl.Buffered(1)),             # b_ih
            ],
            out_specs=pl.BlockSpec((tile_n, F_pad), lambda i: (i, 0)),
        ),
        compiler_params=pltpu.CompilerParams(
            dimension_semantics=("parallel",),     # no cross-tile state -> megacore-shardable
            vmem_limit_bytes=vmem_limit,
        ),
    )(ml, hv, gh, feats, w_ih, b_ih)

    return out_padded[:N, :F]


def init_params(key, node_feat_size, edge_hidden_size):
    """Deterministic synthetic init (nn.Linear / nn.GRUCell shapes, pre-transposed for x @ W)."""
    F, H = node_feat_size, edge_hidden_size
    k = jax.random.split(key, 6)
    s_lin = 1.0 / jnp.sqrt(jnp.float32(F))
    s_gru = 1.0 / jnp.sqrt(jnp.float32(F))
    return {
        "w_proj": jax.random.uniform(k[0], (F, H), jnp.float32, -s_lin, s_lin),
        "b_proj": jax.random.uniform(k[1], (1, H), jnp.float32, -s_lin, s_lin),
        "w_ih":   jax.random.uniform(k[2], (H, 3 * F), jnp.float32, -s_gru, s_gru),
        "w_hh":   jax.random.uniform(k[3], (F, 3 * F), jnp.float32, -s_gru, s_gru),
        "b_ih":   jax.random.uniform(k[4], (1, 3 * F), jnp.float32, -s_gru, s_gru),
        "b_hh":   jax.random.uniform(k[5], (1, 3 * F), jnp.float32, -s_gru, s_gru),
    }


def reference(edge_logits, adj_mask, node_feats, params):
    """Pure-JAX reference of the PyTorch forward (eval mode)."""
    F = node_feats.shape[1]
    ml = jnp.where(adj_mask > 0, edge_logits, _NEG_FILL)
    rowmax = jnp.max(ml, axis=-1, keepdims=True)
    p = jnp.where(adj_mask > 0, jnp.exp(ml - rowmax), 0.0)
    a = p / jnp.maximum(jnp.sum(p, axis=-1, keepdims=True), 1e-30)
    hv = node_feats @ params["w_proj"] + params["b_proj"]
    c = a @ hv
    context = jnp.where(c > 0, c, jnp.exp(jnp.minimum(c, 0.0)) - 1.0)
    gi = context @ params["w_ih"] + params["b_ih"]
    gh = node_feats @ params["w_hh"] + params["b_hh"]
    i_r, i_z, i_n = gi[:, :F], gi[:, F:2 * F], gi[:, 2 * F:]
    h_r, h_z, h_n = gh[:, :F], gh[:, F:2 * F], gh[:, 2 * F:]
    r = jax.nn.sigmoid(i_r + h_r)
    z = jax.nn.sigmoid(i_z + h_z)
    n = jnp.tanh(i_n + r * h_n)
    new_h = (1.0 - z) * n + z * node_feats
    return jnp.maximum(new_h, 0.0)


if __name__ == "__main__":
    N = 8    # number of nodes
    F = 32   # node_feat_size
    H = 16   # edge_hidden_size

    key = jax.random.PRNGKey(0)
    k_feat, k_logit, k_adj, k_par = jax.random.split(key, 4)

    node_feats = jax.random.normal(k_feat, (N, F), jnp.float32)
    edge_logits = jax.random.normal(k_logit, (N, N), jnp.float32)
    # random sparse adjacency + self-loops so every node has >= 1 incoming edge
    adj_mask = (jax.random.uniform(k_adj, (N, N)) < 0.4).astype(jnp.float32)
    adj_mask = jnp.maximum(adj_mask, jnp.eye(N, dtype=jnp.float32))

    params = init_params(k_par, F, H)

    # jit the wrapper so host-side mask-fold / pad / cast and the hoisted projections fuse
    fwd = jax.jit(lambda el, am, nf, p: attentive_gru2(el, am, nf, p))
    out = jax.block_until_ready(fwd(edge_logits, adj_mask, node_feats, params))

    ref = reference(edge_logits, adj_mask, node_feats, params)
    max_err = float(jnp.max(jnp.abs(out - ref)))
    assert out.shape == (N, F) and out.dtype == jnp.float32
    assert max_err < 5e-2, f"mismatch vs reference: {max_err}"
    print("KERNEL_OK")
</pallas_src>

<mosaic_0001>
module attributes {stable_mosaic.version = 11 : i64} {
  func.func @attentive_gru2_kernel(%arg0: i32, %arg1: memref<128x128xbf16, #tpu.memory_space<vmem>>, %arg2: memref<128x128xbf16, #tpu.memory_space<vmem>>, %arg3: memref<128x384xf32, #tpu.memory_space<vmem>>, %arg4: memref<128x128xf32, #tpu.memory_space<vmem>>, %arg5: memref<128x384xf32, #tpu.memory_space<vmem>>, %arg6: memref<1x384xf32, #tpu.memory_space<vmem>>, %arg7: memref<128x128xf32, #tpu.memory_space<vmem>>) attributes {dimension_semantics = [#tpu.dimension_semantics<parallel>], iteration_bounds = array<i64: 1>, scalar_prefetch = 0 : i64, scratch_operands = 0 : i64, tpu.core_type = #tpu.core_type<tc>, window_params = [{transform_indices = @transform_0, window_bounds = array<i64: 128, 128>}, {pipeline_mode = #tpu.pipeline_mode<synchronous>, transform_indices = @transform_1, window_bounds = array<i64: 128, 128>}, {transform_indices = @transform_2, window_bounds = array<i64: 128, 384>}, {transform_indices = @transform_3, window_bounds = array<i64: 128, 128>}, {pipeline_mode = #tpu.pipeline_mode<synchronous>, transform_indices = @transform_4, window_bounds = array<i64: 128, 384>}, {pipeline_mode = #tpu.pipeline_mode<synchronous>, transform_indices = @transform_5, window_bounds = array<i64: 1, 384>}, {transform_indices = @transform_6, window_bounds = array<i64: 128, 128>}]} {
    %c0 = arith.constant 0 : index
    %c0_0 = arith.constant 0 : index
    %0 = vector.load %arg1[%c0, %c0_0] : memref<128x128xbf16, #tpu.memory_space<vmem>>, vector<128x128xbf16>
    %1 = arith.extf %0 : vector<128x128xbf16> to vector<128x128xf32>
    %cst = arith.constant -1.000000e+29 : f32
    %2 = vector.broadcast %cst : f32 to vector<128x128xf32>
    %3 = arith.cmpf ogt, %1, %2 : vector<128x128xf32>
    %cst_1 = arith.constant dense<0xFF800000> : vector<128xf32>
    %4 = vector.multi_reduction <maximumf>, %1, %cst_1 [1] : vector<128x128xf32> to vector<128xf32>
    %5 = vector.shape_cast %4 : vector<128xf32> to vector<128x1xf32>
    %6 = vector.broadcast %5 : vector<128x1xf32> to vector<128x128xf32>
    %7 = arith.subf %1, %6 : vector<128x128xf32>
    %8 = math.exp %7 : vector<128x128xf32>
    %cst_2 = arith.constant 0.000000e+00 : f32
    %9 = vector.broadcast %cst_2 : f32 to vector<128x128xf32>
    %10 = arith.select %3, %8, %9 : vector<128x128xi1>, vector<128x128xf32>
    %cst_3 = arith.constant dense<0.000000e+00> : vector<128xf32>
    %11 = vector.multi_reduction <add>, %10, %cst_3 [1] : vector<128x128xf32> to vector<128xf32>
    %12 = vector.shape_cast %11 : vector<128xf32> to vector<128x1xf32>
    %13 = arith.truncf %10 : vector<128x128xf32> to vector<128x128xbf16>
    %c0_4 = arith.constant 0 : index
    %c0_5 = arith.constant 0 : index
    %14 = vector.load %arg2[%c0_4, %c0_5] : memref<128x128xbf16, #tpu.memory_space<vmem>>, vector<128x128xbf16>
    %cst_6 = arith.constant dense<0.000000e+00> : vector<128x128xf32>
    %15 = tpu.matmul %13, %14, %cst_6 {dimension_numbers = #tpu.dot_dimension_numbers<[1], [0], [0], [1], [0, 0, 1, 1], [], []>} : vector<128x128xbf16>, vector<128x128xbf16>, vector<128x128xf32> -> vector<128x128xf32>
    %cst_7 = arith.constant 1.000000e+00 : f32
    %16 = vector.broadcast %cst_7 : f32 to vector<128x1xf32>
    %17 = arith.maximumf %12, %16 : vector<128x1xf32>
    %18 = tpu.reciprocal %17 {approx = true} : vector<128x1xf32> -> vector<128x1xf32>
    %19 = vector.broadcast %18 : vector<128x1xf32> to vector<128x128xf32>
    %20 = arith.mulf %15, %19 : vector<128x128xf32>
    %cst_8 = arith.constant 0.000000e+00 : f32
    %21 = vector.broadcast %cst_8 : f32 to vector<128x128xf32>
    %22 = arith.cmpf ogt, %20, %21 : vector<128x128xf32>
    %cst_9 = arith.constant 0.000000e+00 : f32
    %23 = vector.broadcast %cst_9 : f32 to vector<128x128xf32>
    %24 = arith.minimumf %20, %23 : vector<128x128xf32>
    %25 = math.exp %24 : vector<128x128xf32>
    %cst_10 = arith.constant 1.000000e+00 : f32
    %26 = vector.broadcast %cst_10 : f32 to vector<128x128xf32>
    %27 = arith.subf %25, %26 : vector<128x128xf32>
    %28 = arith.select %22, %20, %27 : vector<128x128xi1>, vector<128x128xf32>
    %c0_11 = arith.constant 0 : index
    %c0_12 = arith.constant 0 : index
    %29 = vector.load %arg5[%c0_11, %c0_12] : memref<128x384xf32, #tpu.memory_space<vmem>>, vector<128x384xf32>
    %cst_13 = arith.constant dense<0.000000e+00> : vector<128x384xf32>
    %30 = tpu.matmul %28, %29, %cst_13 {dimension_numbers = #tpu.dot_dimension_numbers<[1], [0], [0], [1], [0, 0, 1, 1], [], []>} : vector<128x128xf32>, vector<128x384xf32>, vector<128x384xf32> -> vector<128x384xf32>
    %c0_14 = arith.constant 0 : index
    %c0_15 = arith.constant 0 : index
    %31 = vector.load %arg6[%c0_14, %c0_15] : memref<1x384xf32, #tpu.memory_space<vmem>>, vector<1x384xf32>
    %32 = vector.broadcast %31 : vector<1x384xf32> to vector<128x384xf32>
    %33 = arith.addf %30, %32 : vector<128x384xf32>
    %c0_16 = arith.constant 0 : index
    %c0_17 = arith.constant 0 : index
    %34 = vector.load %arg3[%c0_16, %c0_17] : memref<128x384xf32, #tpu.memory_space<vmem>>, vector<128x384xf32>
    %c0_18 = arith.constant 0 : index
    %c0_19 = arith.constant 0 : index
    %35 = vector.load %arg4[%c0_18, %c0_19] : memref<128x128xf32, #tpu.memory_space<vmem>>, vector<128x128xf32>
    %36 = vector.extract_strided_slice %33 {offsets = [0, 0], sizes = [128, 128], strides = [1, 1]} : vector<128x384xf32> to vector<128x128xf32>
    %37 = vector.extract_strided_slice %33 {offsets = [0, 128], sizes = [128, 128], strides = [1, 1]} : vector<128x384xf32> to vector<128x128xf32>
    %38 = vector.extract_strided_slice %33 {offsets = [0, 256], sizes = [128, 128], strides = [1, 1]} : vector<128x384xf32> to vector<128x128xf32>
    %39 = vector.extract_strided_slice %34 {offsets = [0, 0], sizes = [128, 128], strides = [1, 1]} : vector<128x384xf32> to vector<128x128xf32>
    %40 = vector.extract_strided_slice %34 {offsets = [0, 128], sizes = [128, 128], strides = [1, 1]} : vector<128x384xf32> to vector<128x128xf32>
    %41 = vector.extract_strided_slice %34 {offsets = [0, 256], sizes = [128, 128], strides = [1, 1]} : vector<128x384xf32> to vector<128x128xf32>
    %42 = arith.addf %36, %39 : vector<128x128xf32>
    %43 = arith.negf %42 : vector<128x128xf32>
    %44 = math.exp %43 : vector<128x128xf32>
    %cst_20 = arith.constant 1.000000e+00 : f32
    %45 = vector.broadcast %cst_20 : f32 to vector<128x128xf32>
    %46 = arith.addf %45, %44 : vector<128x128xf32>
    %47 = arith.divf %45, %46 : vector<128x128xf32>
    %48 = arith.addf %37, %40 : vector<128x128xf32>
    %49 = arith.negf %48 : vector<128x128xf32>
    %50 = math.exp %49 : vector<128x128xf32>
    %cst_21 = arith.constant 1.000000e+00 : f32
    %51 = vector.broadcast %cst_21 : f32 to vector<128x128xf32>
    %52 = arith.addf %51, %50 : vector<128x128xf32>
    %53 = arith.divf %51, %52 : vector<128x128xf32>
    %54 = arith.mulf %47, %41 : vector<128x128xf32>
    %55 = arith.addf %38, %54 : vector<128x128xf32>
    %56 = math.tanh %55 : vector<128x128xf32>
    %cst_22 = arith.constant 1.000000e+00 : f32
    %57 = vector.broadcast %cst_22 : f32 to vector<128x128xf32>
    %58 = arith.subf %57, %53 : vector<128x128xf32>
    %59 = arith.mulf %58, %56 : vector<128x128xf32>
    %60 = arith.mulf %53, %35 : vector<128x128xf32>
    %61 = arith.addf %59, %60 : vector<128x128xf32>
    %cst_23 = arith.constant 0.000000e+00 : f32
    %62 = vector.broadcast %cst_23 : f32 to vector<128x128xf32>
    %63 = arith.maximumf %61, %62 : vector<128x128xf32>
    %c0_24 = arith.constant 0 : index
    %c0_25 = arith.constant 0 : index
    %64 = vector.load %arg7[%c0_24, %c0_25] : memref<128x128xf32, #tpu.memory_space<vmem>>, vector<128x128xf32>
    tpu.vector_store %arg7[%c0_24, %c0_25], %63 {strides = array<i32>} : memref<128x128xf32, #tpu.memory_space<vmem>>, vector<128x128xf32>,
    return
  }
  func.func @transform_0(%arg0: i32) -> (i32, i32) {
    %c0_i32 = arith.constant 0 : i32
    %c0_i32_0 = arith.constant 0 : i32
    return %arg0, %c0_i32 : i32, i32
  }
  func.func @transform_1(%arg0: i32) -> (i32, i32) {
    %c0_i32 = arith.constant 0 : i32
    %c0_i32_0 = arith.constant 0 : i32
    %c0_i32_1 = arith.constant 0 : i32
    return %c0_i32, %c0_i32_0 : i32, i32
  }
  func.func @transform_2(%arg0: i32) -> (i32, i32) {
    %c0_i32 = arith.constant 0 : i32
    %c0_i32_0 = arith.constant 0 : i32
    return %arg0, %c0_i32 : i32, i32
  }
  func.func @transform_3(%arg0: i32) -> (i32, i32) {
    %c0_i32 = arith.constant 0 : i32
    %c0_i32_0 = arith.constant 0 : i32
    return %arg0, %c0_i32 : i32, i32
  }
  func.func @transform_4(%arg0: i32) -> (i32, i32) {
    %c0_i32 = arith.constant 0 : i32
    %c0_i32_0 = arith.constant 0 : i32
    %c0_i32_1 = arith.constant 0 : i32
    return %c0_i32, %c0_i32_0 : i32, i32
  }
  func.func @transform_5(%arg0: i32) -> (i32, i32) {
    %c0_i32 = arith.constant 0 : i32
    %c0_i32_0 = arith.constant 0 : i32
    %c0_i32_1 = arith.constant 0 : i32
    return %c0_i32, %c0_i32_0 : i32, i32
  }
  func.func @transform_6(%arg0: i32) -> (i32, i32) {
    %c0_i32 = arith.constant 0 : i32
    %c0_i32_0 = arith.constant 0 : i32
    return %arg0, %c0_i32 : i32, i32
  }
}

</mosaic_0001>

<bundles_post_ra>
// kernel: _lambda_.1
= control target key start
LH: loop header
LB: loop body
LE: loop exit
PB: predicated region body
PF: predicated region fallthrough
CT: control target
= control target key end

     0   :  { %s3243_s0 = inlined_call_operand.vmem [shape: bf16[128,128], index: 0, kind: input, shape index: {}]   ;;  %s3244_s1 = inlined_call_operand.vmem [shape: bf16[128,128], index: 1, kind: input, shape index: {}]   ;;  %s3245_s4 = inlined_call_operand.vmem [shape: f32[128,384], index: 4, kind: input, shape index: {}]   ;;  %s3246_s5 = inlined_call_operand.vmem [shape: f32[1,384], index: 5, kind: input, shape index: {}]   ;;  %s3247_s2 = inlined_call_operand.vmem [shape: f32[128,384], index: 2, kind: input, shape index: {}]   ;;  %s3248_s3 = inlined_call_operand.vmem [shape: f32[128,128], index: 3, kind: input, shape index: {}]   ;;  %s3249_s6 = inlined_call_operand.vmem [shape: f32[128,128], index: 6, kind: output, shape index: {}]  }
   0x1   :  { %v1680_v0 = vld [vmem:[%s3243_s0] sm:$0xff]   ;;  %v1711_v1 = vld [vmem:[%s3243_s0 + $0x8] sm:$0xff]   ;;  %v1712_v2 = vld [vmem:[%s3243_s0 + $0x10] sm:$0xff]  }
   0x2   :  { %v2018_v3 = vunpack.c.l.bf16 %v1680_v0  ;;  %v2020_v4 = vunpack.c.l.bf16 %v1711_v1  ;;  %v2022_v5 = vunpack.c.l.bf16 %v1712_v2  ;;  %v1678_v6 = vld [vmem:[%s3244_s1 + $0x38] sm:$0xff]  ;;  %v1677_v7 = vld [vmem:[%s3244_s1 + $0x30] sm:$0xff]  ;;  %v2033_v8 = vunpack.c.h.bf16 %v1680_v0  ;;  %v1676_v11 = vld [vmem:[%s3244_s1 + $0x28] sm:$0xff] }
   0x3   :  { %271 = vmatpush.bf16.msra.mxu0 %v1678_v6  ;;  %v2035_v9 = vunpack.c.h.bf16 %v1711_v1  ;;  %v2037_v10 = vunpack.c.h.bf16 %v1712_v2  ;;  %v1713_v12 = vld [vmem:[%s3243_s0 + $0x18] sm:$0xff]   ;;  %v1714_v13 = vld [vmem:[%s3243_s0 + $0x20] sm:$0xff]   ;;  %v1715_v17 = vld [vmem:[%s3243_s0 + $0x28] sm:$0xff]  }
   0x4   :  { %71 = vmax.xlane.f32.xlu0 %v2018_v3  ;;  %75 = vmax.xlane.f32.xlu1 %v2020_v4  ;;  %v2051_v14 = vunpack.c.h.bf16 %v1713_v12  ;;  %v2053_v15 = vunpack.c.l.bf16 %v1713_v12  ;;  %v2055_v16 = vunpack.c.l.bf16 %v1714_v13  ;;  %v2063_v18 = vunpack.c.h.bf16 %v1714_v13  ;;  %v1716_v21 = vld [vmem:[%s3243_s0 + $0x30] sm:$0xff]   ;;  %v1675_v24 = vld [vmem:[%s3244_s1 + $0x20] sm:$0xff]  ;;  %v1717_v25 = vld [vmem:[%s3243_s0 + $0x38] sm:$0xff]  }
   0x5   :  { %79 = vmax.xlane.f32.xlu2 %v2022_v5  ;;  %v2065_v19 = vunpack.c.l.bf16 %v1715_v17  ;;  %v2067_v20 = vunpack.c.h.bf16 %v1715_v17  ;;  %v2075_v22 = vunpack.c.h.bf16 %v1716_v21  ;;  %v2077_v23 = vunpack.c.l.bf16 %v1716_v21  ;;  %v1674_v28 = vld [vmem:[%s3244_s1 + $0x18] sm:$0xff]  ;;  %v1673_v29 = vld [vmem:[%s3244_s1 + $0x10] sm:$0xff]  ;;  %v1672_v30 = vld [vmem:[%s3244_s1 + $0x8] sm:$0xff] }
   0x6   :  { %v2087_v26 = vunpack.c.l.bf16 %v1717_v25  ;;  %v2089_v27 = vunpack.c.h.bf16 %v1717_v25  ;;  %v1671_v31 = vld [vmem:[%s3244_s1] sm:$0xff]  ;;  %vm55_vm0 = vcmp.gt.f32.partialorder %v2018_v3, -1e+29  ;;  %vm57_vm1 = vcmp.gt.f32.partialorder %v2020_v4, -1e+29 }
   0x7   :  { %272 = vmatpush.bf16.msra.mxu0 %v1677_v7  ;;  %vm56_vm2 = vcmp.gt.f32.partialorder %v2033_v8, -1e+29  ;;  %vm58_vm3 = vcmp.gt.f32.partialorder %v2035_v9, -1e+29  ;;  %vm60_vm5 = vcmp.gt.f32.partialorder %v2037_v10, -1e+29 }
   0x8   :  { %vm1599_vm4 = vmpackc.low %vm56_vm2, %vm55_vm0  ;;  %vm59_vm6 = vcmp.gt.f32.partialorder %v2022_v5, -1e+29  ;;  %vm62_vm7 = vcmp.gt.f32.partialorder %v2051_v14, -1e+29  ;;  %vm61_vm8 = vcmp.gt.f32.partialorder %v2053_v15, -1e+29 }
   0x9   :  { %vm1602_vm9 = vmpackc.low %vm58_vm3, %vm57_vm1  ;;  %vm63_vm10 = vcmp.gt.f32.partialorder %v2055_v16, -1e+29  ;;  %vm64_vm11 = vcmp.gt.f32.partialorder %v2063_v18, -1e+29  ;;  %vm66_vm13 = vcmp.gt.f32.partialorder %v2067_v20, -1e+29 }
   0xa   :  { %vm1605_vm12 = vmpackc.low %vm60_vm5, %vm59_vm6  ;;  %vm65_vm14 = vcmp.gt.f32.partialorder %v2065_v19, -1e+29 }
   0xb   :  { %273 = vmatpush.bf16.msra.mxu0 %v1676_v11  ;;  %vm1608_vm15 = vmpackc.low %vm62_vm7, %vm61_vm8 }
   0xc   :  { %73 = vmax.xlane.f32.xlu0 %v2033_v8  ;;  %77 = vmax.xlane.f32.xlu1 %v2035_v9 }
   0xd   :  { %81 = vmax.xlane.f32.xlu2 %v2037_v10 }
   0xf   :  { %274 = vmatpush.bf16.msra.mxu0 %v1675_v24 }
  0x13   :  { %275 = vmatpush.bf16.msra.mxu0 %v1674_v28 }
  0x14   :  { %85 = vmax.xlane.f32.xlu1 %v2051_v14  ;;  %83 = vmax.xlane.f32.xlu0 %v2053_v15 }
  0x15   :  { %87 = vmax.xlane.f32.xlu2 %v2055_v16 }
  0x17   :  { %276 = vmatpush.bf16.msra.mxu0 %v1673_v29 }
  0x1b   :  { %277 = vmatpush.bf16.msra.mxu0 %v1672_v30 }
  0x1c   :  { %89 = vmax.xlane.f32.xlu0 %v2063_v18  ;;  %91 = vmax.xlane.f32.xlu1 %v2065_v19 }
  0x1d   :  { %93 = vmax.xlane.f32.xlu2 %v2067_v20 }
  0x1f   :  { %278 = vmatpush.bf16.msra.mxu0 %v1671_v31 }
  0x24   :  { %97 = vmax.xlane.f32.xlu1 %v2075_v22  ;;  %95 = vmax.xlane.f32.xlu0 %v2077_v23 }
  0x25   :  { %99 = vmax.xlane.f32.xlu2 %v2087_v26 }
  0x2c   :  { %101 = vmax.xlane.f32.xlu0 %v2089_v27 }
  0x77   :  { %v72_v32 = vpop.xlane.xlu0 %71  ;;  %v76_v33 = vpop.xlane.xlu1 %75 }
  0x78   :  { %v103_v34 = vsub.f32 %v2018_v3, %v72_v32  ;;  %v105_v35 = vsub.f32 %v2020_v4, %v76_v33  ;;  %v80_v36 = vpop.xlane.xlu2 %79 }
  0x79   :  { %v107_v43 = vsub.f32 %v2022_v5, %v80_v36 }
  0x7a   :  { %v119_v37 = vmul.f32 1.442695, %v103_v34  ;;  %v123_v38 = vmul.f32 1.442695, %v105_v35 }
  0x7b   :  { %v127_v52 = vmul.f32 1.442695, %v107_v43 }
  0x7c   :  { %1718 = vpow2.f32 %v119_v37 }
  0x7d   :  { %1720 = vpow2.f32 %v123_v38 }
  0x7f   :  { %v74_v39 = vpop.xlane.xlu0 %73  ;;  %v78_v40 = vpop.xlane.xlu1 %77 }
  0x80   :  { %v104_v41 = vsub.f32 %v2033_v8, %v74_v39  ;;  %v106_v42 = vsub.f32 %v2035_v9, %v78_v40  ;;  %v82_v44 = vpop.xlane.xlu2 %81 }
  0x81   :  { %v108_v45 = vsub.f32 %v2037_v10, %v82_v44 }
  0x82   :  { %v1719_v46 = vpop.eup %1718  ;;  %v121_v47 = vmul.f32 1.442695, %v104_v41  ;;  %v125_v48 = vmul.f32 1.442695, %v106_v42 }
  0x83   :  { %v1721_v49 = vpop.eup %1720  ;;  %v151_v50 = vsel %vm55_vm0, %v1719_v46, 0.0  ;;  %v129_v51 = vmul.f32 1.442695, %v108_v45  ;;  %vm68_vm0 = vcmp.gt.f32.partialorder %v2075_v22, -1e+29 }
  0x84   :  { %1722 = vpow2.f32 %v121_v47  ;;  %167 = vadd.xlane.f32.xlu1 %v151_v50  ;;  %v153_v53 = vsel %vm57_vm1, %v1721_v49, 0.0  ;;  %vm67_vm1 = vcmp.gt.f32.partialorder %v2077_v23, -1e+29 }
  0x85   :  { %1724 = vpow2.f32 %v125_v48  ;;  %171 = vadd.xlane.f32.xlu0 %v153_v53 }
  0x86   :  { %1726 = vpow2.f32 %v129_v51 }
  0x87   :  { %1728 = vpow2.f32 %v127_v52  ;;  %v86_v61 = vpop.xlane.xlu1 %85  ;;  %v84_v62 = vpop.xlane.xlu0 %83 }
  0x88   :  { %v110_v0 = vsub.f32 %v2051_v14, %v86_v61  ;;  %v109_v1 = vsub.f32 %v2053_v15, %v84_v62  ;;  %v88_v17 = vpop.xlane.xlu2 %87  ;;  %v506_v61 = vld [vmem:[%s3245_s4 + $0x150] sm:$0xff]  ;;  %v507_v62 = vld [vmem:[%s3245_s4 + $0x158] sm:$0xff] }
  0x89   :  { %v111_v24 = vsub.f32 %v2055_v16, %v88_v17  ;;  %v495_v17 = vld [vmem:[%s3245_s4 + $0xf8] sm:$0xff] }
  0x8a   :  { %v1723_v54 = vpop.eup %1722  ;;  %v133_v2 = vmul.f32 1.442695, %v110_v0  ;;  %v131_v3 = vmul.f32 1.442695, %v109_v1  ;;  %v503_v0 = vld [vmem:[%s3245_s4 + $0x138] sm:$0xff]  ;;  %v504_v1 = vld [vmem:[%s3245_s4 + $0x140] sm:$0xff] }
  0x8b   :  { %v1725_v55 = vpop.eup %1724  ;;  %v152_v56 = vsel %vm56_vm2, %v1723_v54, 0.0  ;;  %v1600_v57 = vpack.c.bf16 %v1723_v54, %v1719_v46  ;;  %v135_v28 = vmul.f32 1.442695, %v111_v24  ;;  %vm1611_vm2 = vmpackc.low %vm64_vm11, %vm63_vm10  ;;  %v491_v24 = vld [vmem:[%s3245_s4 + $0xd8] sm:$0xff] }
  0x8c   :  { %v1727_v58 = vpop.eup %1726  ;;  %169 = vadd.xlane.f32.xlu2 %v152_v56  ;;  %v154_v59 = vsel %vm58_vm3, %v1725_v55, 0.0  ;;  %1730 = vpow2.f32 %v133_v2  ;;  %v1603_v13 = vpack.c.bf16 %v1725_v55, %v1721_v49  ;;  %vm1614_vm3 = vmpackc.low %vm66_vm13, %vm65_vm14  ;;  %v505_v2 = vld [vmem:[%s3245_s4 + $0x148] sm:$0xff] }
  0x8d   :  { %1601 = vmatmul.msk.bf16.vlgmr.msra.gmra.mxu0 %vm1599_vm4, %v1600_v57  ;;  %173 = vadd.xlane.f32.xlu1 %v154_v59  ;;  %v156_v60 = vsel %vm60_vm5, %v1727_v58, 0.0  ;;  %v1729_v63 = vpop.eup %1728  ;;  %1732 = vpow2.f32 %v131_v3  ;;  %v509_v57 = vld [vmem:[%s3245_s4 + $0x168] sm:$0xff]  ;;  %v511_v59 = vld [vmem:[%s3245_s4 + $0x178] sm:$0xff]  ;;  %vm69_vm4 = vcmp.gt.f32.partialorder %v2087_v26, -1e+29  ;;  %v500_v3 = vld [vmem:[%s3245_s4 + $0x120] sm:$0xff] }
  0x8e   :  { %177 = vadd.xlane.f32.xlu0 %v156_v60  ;;  %v155_v6 = vsel %vm59_vm6, %v1729_v63, 0.0  ;;  %1734 = vpow2.f32 %v135_v28  ;;  %v1606_v32 = vpack.c.bf16 %v1727_v58, %v1729_v63  ;;  %v510_v58 = vld [vmem:[%s3245_s4 + $0x170] sm:$0xff]  ;;  %520 = vmatpush.msra.mxu1 %v509_v57  ;;  %vm70_vm5 = vcmp.gt.f32.partialorder %v2089_v27, -1e+29  ;;  %v508_v63 = vld [vmem:[%s3245_s4 + $0x160] sm:$0xff]  ;;  %v493_v28 = vld [vmem:[%s3245_s4 + $0xe8] sm:$0xff] }
  0x8f   :  { %v90_v21 = vpop.xlane.xlu0 %89  ;;  %v92_v34 = vpop.xlane.xlu1 %91  ;;  %585 = vmatpush.msra.mxu2 %v510_v58  ;;  %650 = vmatpush.msra.mxu3 %v511_v59  ;;  %vm1617_vm6 = vmpackc.low %vm68_vm0, %vm67_vm1 }
  0x90   :  { %v112_v25 = vsub.f32 %v2063_v18, %v90_v21  ;;  %v94_v33 = vpop.xlane.xlu2 %93  ;;  %v113_v36 = vsub.f32 %v2065_v19, %v92_v34  ;;  %521 = vmatpush.msra.mxu1 %v506_v61  ;;  %v496_v21 = vld [vmem:[%s3245_s4 + $0x100] sm:$0xff] }
  0x91   :  { %v114_v35 = vsub.f32 %v2067_v20, %v94_v33  ;;  %586 = vmatpush.msra.mxu2 %v507_v62  ;;  %651 = vmatpush.msra.mxu3 %v508_v63  ;;  %v487_v33 = vld [vmem:[%s3245_s4 + $0xb8] sm:$0xff]  ;;  %v484_v34 = vld [vmem:[%s3245_s4 + $0xa0] sm:$0xff] }
  0x92   :  { %v1731_v7 = vpop.eup %1730  ;;  %v137_v29 = vmul.f32 1.442695, %v112_v25  ;;  %v139_v38 = vmul.f32 1.442695, %v113_v36  ;;  %522 = vmatpush.msra.mxu1 %v503_v0  ;;  %v492_v25 = vld [vmem:[%s3245_s4 + $0xe0] sm:$0xff] }
  0x93   :  { %v1733_v8 = vpop.eup %1732  ;;  %v158_v11 = vsel %vm62_vm7, %v1731_v7, 0.0  ;;  %v141_v37 = vmul.f32 1.442695, %v114_v35  ;;  %587 = vmatpush.msra.mxu2 %v504_v1  ;;  %652 = vmatpush.msra.mxu3 %v505_v2  ;;  %v479_v35 = vld [vmem:[%s3245_s4 + $0x78] sm:$0xff]  ;;  %v480_v36 = vld [vmem:[%s3245_s4 + $0x80] sm:$0xff]  ;;  %vm1620_vm7 = vmpackc.low %vm70_vm5, %vm69_vm4 }
  0x94   :  { %175 = vadd.xlane.f32.xlu2 %v155_v6  ;;  %v157_v12 = vsel %vm61_vm8, %v1733_v8, 0.0  ;;  %1736 = vpow2.f32 %v137_v29  ;;  %v1735_v4 = vpop.eup %1734  ;;  %v1609_v39 = vpack.c.bf16 %v1731_v7, %v1733_v8  ;;  %v501_v6 = vld [vmem:[%s3245_s4 + $0x128] sm:$0xff]  ;;  %v502_v7 = vld [vmem:[%s3245_s4 + $0x130] sm:$0xff]  ;;  %523 = vmatpush.msra.mxu1 %v500_v3 }
  0x95   :  { %179 = vadd.xlane.f32.xlu1 %v157_v12  ;;  %v159_v30 = vsel %vm63_vm10, %v1735_v4, 0.0  ;;  %1738 = vpow2.f32 %v141_v37  ;;  %588 = vmatpush.msra.mxu2 %v501_v6  ;;  %v497_v8 = vld [vmem:[%s3245_s4 + $0x108] sm:$0xff]  ;;  %v499_v12 = vld [vmem:[%s3245_s4 + $0x118] sm:$0xff] }
  0x96   :  { %183 = vadd.xlane.f32.xlu0 %v159_v30  ;;  %1740 = vpow2.f32 %v139_v38  ;;  %653 = vmatpush.msra.mxu3 %v502_v7  ;;  %v490_v30 = vld [vmem:[%s3245_s4 + $0xd0] sm:$0xff]  ;;  %v481_v37 = vld [vmem:[%s3245_s4 + $0x88] sm:$0xff]  ;;  %v476_v38 = vld [vmem:[%s3245_s4 + $0x60] sm:$0xff] }
  0x97   :  { %v98_v42 = vpop.xlane.xlu1 %97  ;;  %v96_v43 = vpop.xlane.xlu0 %95  ;;  %524 = vmatpush.msra.mxu1 %v497_v8 }
  0x98   :  { %v116_v44 = vsub.f32 %v2075_v22, %v98_v42  ;;  %v115_v45 = vsub.f32 %v2077_v23, %v96_v43  ;;  %v100_v51 = vpop.xlane.xlu2 %99  ;;  %654 = vmatpush.msra.mxu3 %v499_v12  ;;  %v482_v22 = vld [vmem:[%s3245_s4 + $0x90] sm:$0xff]  ;;  %v483_v23 = vld [vmem:[%s3245_s4 + $0x98] sm:$0xff] }
  0x99   :  { %v117_v53 = vsub.f32 %v2087_v26, %v100_v51  ;;  %v470_v42 = vld [vmem:[%s3245_s4 + $0x30] sm:$0xff]  ;;  %v471_v43 = vld [vmem:[%s3245_s4 + $0x38] sm:$0xff] }
  0x9a   :  { %v1737_v9 = vpop.eup %1736  ;;  %v145_v46 = vmul.f32 1.442695, %v116_v44  ;;  %v143_v47 = vmul.f32 1.442695, %v115_v45  ;;  %655 = vmatpush.msra.mxu3 %v496_v21  ;;  %v472_v44 = vld [vmem:[%s3245_s4 + $0x40] sm:$0xff]  ;;  %v467_v45 = vld [vmem:[%s3245_s4 + $0x18] sm:$0xff] }
  0x9b   :  { %v160_v31 = vsel %vm64_vm11, %v1737_v9, 0.0  ;;  %v1739_v5 = vpop.eup %1738  ;;  %v1612_v48 = vpack.c.bf16 %v1737_v9, %v1735_v4  ;;  %v147_v55 = vmul.f32 1.442695, %v117_v53  ;;  %v488_v4 = vld [vmem:[%s3245_s4 + $0xc0] sm:$0xff]  ;;  %v489_v9 = vld [vmem:[%s3245_s4 + $0xc8] sm:$0xff] }
  0x9c   :  { %181 = vadd.xlane.f32.xlu2 %v158_v11  ;;  %v1741_v10 = vpop.eup %1740  ;;  %v162_v40 = vsel %vm66_vm13, %v1739_v5, 0.0  ;;  %1742 = vpow2.f32 %v145_v46  ;;  %v498_v11 = vld [vmem:[%s3245_s4 + $0x110] sm:$0xff]  ;;  %656 = vmatpush.msra.mxu3 %v493_v28  ;;  %v468_v46 = vld [vmem:[%s3245_s4 + $0x20] sm:$0xff] }
  0x9d   :  { %1604 = vmatmul.msk.bf16.gmra.mxu0 %vm1602_vm9, %v1603_v13  ;;  %185 = vadd.xlane.f32.xlu1 %v160_v31  ;;  %v161_v41 = vsel %vm65_vm14, %v1741_v10, 0.0  ;;  %1744 = vpow2.f32 %v143_v47  ;;  %v1615_v16 = vpack.c.bf16 %v1739_v5, %v1741_v10  ;;  %v494_v13 = vld [vmem:[%s3245_s4 + $0xf0] sm:$0xff]  ;;  %v485_v31 = vld [vmem:[%s3245_s4 + $0xa8] sm:$0xff] }
  0x9e   :  { %189 = vadd.xlane.f32.xlu0 %v162_v40  ;;  %1746 = vpow2.f32 %v147_v55  ;;  %589 = vmatpush.msra.mxu2 %v498_v11  ;;  %v477_v5 = vld [vmem:[%s3245_s4 + $0x68] sm:$0xff]  ;;  %v478_v10 = vld [vmem:[%s3245_s4 + $0x70] sm:$0xff] }
  0x9f   :  { %v102_v52 = vpop.xlane.xlu0 %101  ;;  %525 = vmatpush.msra.mxu1 %v494_v13  ;;  %657 = vmatpush.msra.mxu3 %v490_v30  ;;  %v474_v40 = vld [vmem:[%s3245_s4 + $0x50] sm:$0xff]  ;;  %v469_v47 = vld [vmem:[%s3245_s4 + $0x28] sm:$0xff] }
  0xa0   :  { %v118_v54 = vsub.f32 %v2089_v27, %v102_v52  ;;  %590 = vmatpush.msra.mxu2 %v495_v17 }
  0xa1   :  { %526 = vmatpush.msra.mxu1 %v491_v24  ;;  %658 = vmatpush.msra.mxu3 %v487_v33 }
  0xa2   :  { %v2169_v14 = vpop.eup %1742  ;;  %v149_v56 = vmul.f32 1.442695, %v118_v54  ;;  %591 = vmatpush.msra.mxu2 %v492_v25 }
  0xa3   :  { %v2171_v15 = vpop.eup %1744  ;;  %v164_v49 = vsel %vm68_vm0, %v2169_v14, 0.0  ;;  %527 = vmatpush.msra.mxu1 %v488_v4  ;;  %659 = vmatpush.msra.mxu3 %v484_v34 }
  0xa4   :  { %187 = vadd.xlane.f32.xlu2 %v161_v41  ;;  %v163_v50 = vsel %vm67_vm1, %v2171_v15, 0.0  ;;  %1748 = vpow2.f32 %v149_v56  ;;  %v2189_v18 = vpop.eup %1746  ;;  %v1618_v29 = vpack.c.bf16 %v2169_v14, %v2171_v15  ;;  %592 = vmatpush.msra.mxu2 %v489_v9  ;;  %v475_v41 = vld [vmem:[%s3245_s4 + $0x58] sm:$0xff]  ;;  %v464_v15 = vld [vmem:[%s3245_s4] sm:$0xff] }
  0xa5   :  { %191 = vadd.xlane.f32.xlu1 %v163_v50  ;;  %v165_v20 = vsel %vm69_vm4, %v2189_v18, 0.0  ;;  %528 = vmatpush.msra.mxu1 %v485_v31 }
  0xa6   :  { %195 = vadd.xlane.f32.xlu0 %v165_v20  ;;  %660 = vmatpush.msra.mxu3 %v481_v37 }
  0xa7   :  { %529 = vmatpush.msra.mxu1 %v482_v22 }
  0xa8   :  { %661 = vmatpush.msra.mxu3 %v478_v10 }
  0xa9   :  { %530 = vmatpush.msra.mxu1 %v479_v35 }
  0xaa   :  { %v2201_v19 = vpop.eup %1748  ;;  %662 = vmatpush.msra.mxu3 %v475_v41 }
  0xab   :  { %v166_v60 = vsel %vm70_vm5, %v2201_v19, 0.0  ;;  %531 = vmatpush.msra.mxu1 %v476_v38  ;;  %v1621_v14 = vpack.c.bf16 %v2201_v19, %v2189_v18 }
  0xac   :  { %193 = vadd.xlane.f32.xlu2 %v164_v49  ;;  %663 = vmatpush.msra.mxu3 %v472_v44  ;;  %v466_v49 = vld [vmem:[%s3245_s4 + $0x10] sm:$0xff] }
  0xad   :  { %1607 = vmatmul.msk.bf16.gmra.mxu0 %vm1605_vm12, %v1606_v32  ;;  %197 = vadd.xlane.f32.xlu1 %v166_v60  ;;  %v486_v32 = vld [vmem:[%s3245_s4 + $0xb0] sm:$0xff] }
  0xae   :  { %593 = vmatpush.msra.mxu2 %v486_v32  ;;  %664 = vmatpush.msra.mxu3 %v469_v47 }
  0xb0   :  { %594 = vmatpush.msra.mxu2 %v483_v23  ;;  %665 = vmatpush.msra.mxu3 %v466_v49 }
  0xb2   :  { %595 = vmatpush.msra.mxu2 %v480_v36 }
  0xb4   :  { %596 = vmatpush.msra.mxu2 %v477_v5 }
  0xb6   :  { %597 = vmatpush.msra.mxu2 %v474_v40 }
  0xb8   :  { %598 = vmatpush.msra.mxu2 %v471_v43 }
  0xba   :  { %599 = vmatpush.msra.mxu2 %v468_v46 }
  0xbd   :  { %1610 = vmatmul.msk.bf16.gmra.mxu0 %vm1608_vm15, %v1609_v39  ;;  %v473_v39 = vld [vmem:[%s3245_s4 + $0x48] sm:$0xff] }
  0xbe   :  { %532 = vmatpush.msra.mxu1 %v473_v39 }
  0xc0   :  { %533 = vmatpush.msra.mxu1 %v470_v42 }
  0xc2   :  { %534 = vmatpush.msra.mxu1 %v467_v45 }
  0xc4   :  { %535 = vmatpush.msra.mxu1 %v464_v15 }
  0xcd   :  { %1613 = vmatmul.msk.bf16.gmra.mxu0 %vm1611_vm2, %v1612_v48  ;;  %v465_v48 = vld [vmem:[%s3245_s4 + $0x8] sm:$0xff] }
  0xce   :  { %600 = vmatpush.msra.mxu2 %v465_v48 }
  0xdd   :  { %1616 = vmatmul.msk.bf16.gmra.mxu0 %vm1614_vm3, %v1615_v16 }
  0xed   :  { %1619 = vmatmul.msk.bf16.gmra.mxu0 %vm1617_vm6, %v1618_v29 }
  0xf7   :  { %v168_v50 = vpop.xlane.xlu1 %167 }
  0xf8   :  { %v320_v51 = vmax.f32 %v168_v50, 1.0  ;;  %v172_v16 = vpop.xlane.xlu0 %171 }
  0xf9   :  { %v322_v26 = vmax.f32 %v172_v16, 1.0 }
  0xfa   :  { %1750 = vrcp.f32 %v320_v51 }
  0xfd   :  { %1622 = vmatmul.msk.bf16.gmra.mxu0 %vm1620_vm7, %v1621_v14 }
  0xff   :  { %v170_v52 = vpop.xlane.xlu2 %169 }
 0x100   :  { %v321_v53 = vmax.f32 %v170_v52, 1.0  ;;  %v1751_v54 = vpop.eup %1750  ;;  %v174_v19 = vpop.xlane.xlu1 %173 }
 0x101   :  { %v323_v62 = vmax.f32 %v174_v19, 1.0  ;;  %v178_v28 = vpop.xlane.xlu0 %177 }
 0x102   :  { %1752 = vrcp.f32 %v321_v53  ;;  %v325_v30 = vmax.f32 %v178_v28, 1.0 }
 0x107   :  { %v176_v6 = vpop.xlane.xlu2 %175 }
 0x108   :  { %v1753_v27 = vpop.eup %1752  ;;  %v324_v12 = vmax.f32 %v176_v6, 1.0  ;;  %v180_v35 = vpop.xlane.xlu1 %179 }
 0x109   :  { %v326_v38 = vmax.f32 %v180_v35, 1.0  ;;  %v184_v51 = vpop.xlane.xlu0 %183 }
 0x10a   :  { %v280_v55 = vpop.f32.mrf.mxu0 }
 0x10b   :  { %v352_v56 = vmul.f32 %v1751_v54, %v280_v55  ;;  %v328_v54 = vmax.f32 %v184_v51, 1.0 }
 0x10d   :  { %v384_v18 = vmin.f32 %v352_v56, 0.0  ;;  %vm368_vm8 = vcmp.gt.f32.partialorder %v352_v56, 0.0 }
 0x10f   :  { %v400_v57 = vmul.f32 1.442695, %v384_v18  ;;  %v182_v42 = vpop.xlane.xlu2 %181 }
 0x110   :  { %v327_v46 = vmax.f32 %v182_v42, 1.0 }
 0x111   :  { %1754 = vpow2.f32 %v400_v57 }
 0x112   :  { %v282_v58 = vpop.f32.mrf.mxu0  ;;  %1756 = vrcp.f32 %v322_v26  ;;  %v186_v26 = vpop.xlane.xlu1 %185 }
 0x113   :  { %v353_v59 = vmul.f32 %v1753_v27, %v282_v58  ;;  %v329_v19 = vmax.f32 %v186_v26, 1.0 }
 0x115   :  { %v385_v20 = vmin.f32 %v353_v59, 0.0  ;;  %vm369_vm9 = vcmp.gt.f32.partialorder %v353_v59, 0.0 }
 0x117   :  { %v1755_v60 = vpop.eup %1754  ;;  %v402_v61 = vmul.f32 1.442695, %v385_v20 }
 0x118   :  { %v1623_v63 = vadd.f32 -1.0, %v1755_v60  ;;  %v1757_v0 = vpop.eup %1756 }
 0x119   :  { %1758 = vpow2.f32 %v402_v61 }
 0x11a   :  { %v285_v1 = vpop.f32.mrf.mxu0  ;;  %v448_v2 = vsel %vm368_vm8, %v352_v56, %v1623_v63  ;;  %1760 = vrcp.f32 %v323_v62 }
 0x11b   :  { %v354_v3 = vmul.f32 %v1757_v0, %v285_v1  ;;  %536 = vmatmul.f32.vlgmr.msra.gmra.mxu1 %v448_v2  ;;  %601 = vmatmul.f32.vlgmr.msra.gmra.mxu2 %v448_v2  ;;  %v188_v1 = vpop.xlane.xlu2 %187 }
 0x11c   :  { %666 = vmatmul.f32.vlgmr.msra.gmra.mxu3 %v448_v2  ;;  %v330_v6 = vmax.f32 %v188_v1, 1.0 }
 0x11d   :  { %v386_v7 = vmin.f32 %v354_v3, 0.0  ;;  %vm370_vm10 = vcmp.gt.f32.partialorder %v354_v3, 0.0 }
 0x11f   :  { %v1759_v8 = vpop.eup %1758  ;;  %v404_v11 = vmul.f32 1.442695, %v386_v7 }
 0x120   :  { %v1624_v13 = vadd.f32 -1.0, %v1759_v8  ;;  %v1761_v17 = vpop.eup %1760 }
 0x121   :  { %1762 = vpow2.f32 %v404_v11 }
 0x122   :  { %v287_v21 = vpop.f32.mrf.mxu0  ;;  %v449_v24 = vsel %vm369_vm9, %v353_v59, %v1624_v13  ;;  %1764 = vrcp.f32 %v324_v12 }
 0x123   :  { %v355_v25 = vmul.f32 %v1761_v17, %v287_v21  ;;  %539 = vmatmul.f32.gmra.mxu1 %v449_v24  ;;  %604 = vmatmul.f32.gmra.mxu2 %v449_v24  ;;  %v190_v17 = vpop.xlane.xlu0 %189 }
 0x124   :  { %669 = vmatmul.f32.gmra.mxu3 %v449_v24  ;;  %v331_v28 = vmax.f32 %v190_v17, 1.0 }
 0x125   :  { %v387_v29 = vmin.f32 %v355_v25, 0.0  ;;  %vm371_vm11 = vcmp.gt.f32.partialorder %v355_v25, 0.0 }
 0x127   :  { %v1763_v4 = vpop.eup %1762  ;;  %v406_v9 = vmul.f32 1.442695, %v387_v29 }
 0x128   :  { %v1625_v31 = vadd.f32 -1.0, %v1763_v4  ;;  %v1765_v32 = vpop.eup %1764 }
 0x129   :  { %1766 = vpow2.f32 %v406_v9 }
 0x12a   :  { %v290_v33 = vpop.f32.mrf.mxu0  ;;  %v450_v22 = vsel %vm370_vm10, %v354_v3, %v1625_v31  ;;  %1768 = vrcp.f32 %v325_v30 }
 0x12b   :  { %v356_v23 = vmul.f32 %v1765_v32, %v290_v33  ;;  %542 = vmatmul.f32.gmra.mxu1 %v450_v22  ;;  %607 = vmatmul.f32.gmra.mxu2 %v450_v22  ;;  %v192_v33 = vpop.xlane.xlu1 %191 }
 0x12c   :  { %672 = vmatmul.f32.gmra.mxu3 %v450_v22 }
 0x12d   :  { %v388_v34 = vmin.f32 %v356_v23, 0.0  ;;  %vm372_vm12 = vcmp.gt.f32.partialorder %v356_v23, 0.0 }
 0x12f   :  { %v1767_v36 = vpop.eup %1766  ;;  %v408_v37 = vmul.f32 1.442695, %v388_v34  ;;  %v332_v34 = vmax.f32 %v192_v33, 1.0  ;;  %v716_v33 = vld [vmem:[%s3247_s2 + $0x8] sm:$0xff] }
 0x130   :  { %v1626_v5 = vadd.f32 -1.0, %v1767_v36  ;;  %v1769_v10 = vpop.eup %1768 }
 0x131   :  { %1770 = vpow2.f32 %v408_v37 }
 0x132   :  { %v292_v39 = vpop.f32.mrf.mxu0  ;;  %v451_v40 = vsel %vm371_vm11, %v355_v25, %v1626_v5  ;;  %1772 = vrcp.f32 %v326_v38 }
 0x133   :  { %v357_v41 = vmul.f32 %v1769_v10, %v292_v39  ;;  %545 = vmatmul.f32.gmra.mxu1 %v451_v40  ;;  %610 = vmatmul.f32.gmra.mxu2 %v451_v40  ;;  %v194_v10 = vpop.xlane.xlu2 %193 }
 0x134   :  { %675 = vmatmul.f32.gmra.mxu3 %v451_v40  ;;  %v333_v42 = vmax.f32 %v194_v10, 1.0 }
 0x135   :  { %v389_v43 = vmin.f32 %v357_v41, 0.0  ;;  %vm373_vm13 = vcmp.gt.f32.partialorder %v357_v41, 0.0 }
 0x137   :  { %v1771_v44 = vpop.eup %1770  ;;  %v410_v45 = vmul.f32 1.442695, %v389_v43 }
 0x138   :  { %v1627_v47 = vadd.f32 -1.0, %v1771_v44  ;;  %v1773_v14 = vpop.eup %1772 }
 0x139   :  { %1774 = vpow2.f32 %v410_v45 }
 0x13a   :  { %v295_v15 = vpop.f32.mrf.mxu0  ;;  %v452_v48 = vsel %vm372_vm12, %v356_v23, %v1627_v47  ;;  %1776 = vrcp.f32 %v327_v46 }
 0x13b   :  { %v358_v49 = vmul.f32 %v1773_v14, %v295_v15  ;;  %548 = vmatmul.f32.gmra.mxu1 %v452_v48  ;;  %613 = vmatmul.f32.gmra.mxu2 %v452_v48  ;;  %v196_v15 = vpop.xlane.xlu0 %195 }
 0x13c   :  { %678 = vmatmul.f32.gmra.mxu3 %v452_v48 }
 0x13d   :  { %v390_v50 = vmin.f32 %v358_v49, 0.0  ;;  %vm374_vm14 = vcmp.gt.f32.partialorder %v358_v49, 0.0 }
 0x13f   :  { %v1775_v52 = vpop.eup %1774  ;;  %v412_v53 = vmul.f32 1.442695, %v390_v50  ;;  %v334_v50 = vmax.f32 %v196_v15, 1.0 }
 0x140   :  { %v1628_v55 = vadd.f32 -1.0, %v1775_v52  ;;  %v1777_v56 = vpop.eup %1776 }
 0x141   :  { %1778 = vpow2.f32 %v412_v53 }
 0x142   :  { %v297_v16 = vpop.f32.mrf.mxu0  ;;  %v453_v18 = vsel %vm373_vm13, %v357_v41, %v1628_v55  ;;  %1780 = vrcp.f32 %v328_v54 }
 0x143   :  { %v359_v57 = vmul.f32 %v1777_v56, %v297_v16  ;;  %551 = vmatmul.f32.gmra.mxu1 %v453_v18  ;;  %616 = vmatmul.f32.gmra.mxu2 %v453_v18  ;;  %v198_v56 = vpop.xlane.xlu1 %197 }
 0x144   :  { %681 = vmatmul.f32.gmra.mxu3 %v453_v18  ;;  %v335_v26 = vmax.f32 %v198_v56, 1.0 }
 0x145   :  { %v391_v27 = vmin.f32 %v359_v57, 0.0  ;;  %vm375_vm15 = vcmp.gt.f32.partialorder %v359_v57, 0.0 }
 0x147   :  { %v1779_v58 = vpop.eup %1778  ;;  %v414_v59 = vmul.f32 1.442695, %v391_v27 }
 0x148   :  { %v1629_v20 = vadd.f32 -1.0, %v1779_v58  ;;  %v1781_v60 = vpop.eup %1780 }
 0x149   :  { %1782 = vpow2.f32 %v414_v59 }
 0x14a   :  { %v300_v61 = vpop.f32.mrf.mxu0  ;;  %v454_v62 = vsel %vm374_vm14, %v358_v49, %v1629_v20  ;;  %1784 = vrcp.f32 %v329_v19 }
 0x14b   :  { %v360_v63 = vmul.f32 %v1781_v60, %v300_v61  ;;  %554 = vmatmul.f32.gmra.mxu1 %v454_v62  ;;  %619 = vmatmul.f32.gmra.mxu2 %v454_v62 }
 0x14c   :  { %684 = vmatmul.f32.gmra.mxu3 %v454_v62 }
 0x14d   :  { %v392_v0 = vmin.f32 %v360_v63, 0.0  ;;  %vm376_vm0 = vcmp.gt.f32.partialorder %v360_v63, 0.0 }
 0x14f   :  { %v1783_v2 = vpop.eup %1782  ;;  %v416_v3 = vmul.f32 1.442695, %v392_v0 }
 0x150   :  { %v1630_v7 = vadd.f32 -1.0, %v1783_v2  ;;  %v1785_v8 = vpop.eup %1784 }
 0x151   :  { %1786 = vpow2.f32 %v416_v3 }
 0x152   :  { %v302_v11 = vpop.f32.mrf.mxu0  ;;  %v455_v12 = vsel %vm375_vm15, %v359_v57, %v1630_v7  ;;  %1788 = vrcp.f32 %v330_v6 }
 0x153   :  { %v361_v13 = vmul.f32 %v1785_v8, %v302_v11  ;;  %557 = vmatmul.f32.gmra.mxu1 %v455_v12  ;;  %622 = vmatmul.f32.gmra.mxu2 %v455_v12 }
 0x154   :  { %687 = vmatmul.f32.gmra.mxu3 %v455_v12 }
 0x155   :  { %v393_v21 = vmin.f32 %v361_v13, 0.0  ;;  %vm377_vm1 = vcmp.gt.f32.partialorder %v361_v13, 0.0 }
 0x157   :  { %v1787_v24 = vpop.eup %1786  ;;  %v418_v25 = vmul.f32 1.442695, %v393_v21 }
 0x158   :  { %v1631_v29 = vadd.f32 -1.0, %v1787_v24  ;;  %v1789_v4 = vpop.eup %1788  ;;  %v512_v24 = vld [vmem:[%s3246_s5] sm:$0x7] }
 0x159   :  { %1790 = vpow2.f32 %v418_v25  ;;  %v2360_v25 = vperm.slane %v512_v24, 0 }
 0x15a   :  { %v305_v9 = vpop.f32.mrf.mxu0  ;;  %v456_v30 = vsel %vm376_vm0, %v360_v63, %v1631_v29  ;;  %1792 = vrcp.f32 %v331_v28  ;;  %v715_v29 = vld [vmem:[%s3247_s2] sm:$0xff] }
 0x15b   :  { %v362_v31 = vmul.f32 %v1789_v4, %v305_v9  ;;  %560 = vmatmul.f32.gmra.mxu1 %v456_v30  ;;  %625 = vmatmul.f32.gmra.mxu2 %v456_v30 }
 0x15c   :  { %690 = vmatmul.f32.gmra.mxu3 %v456_v30  ;;  %v2366_v30 = vperm.slane %v512_v24, 1 }
 0x15d   :  { %v394_v32 = vmin.f32 %v362_v31, 0.0  ;;  %vm378_vm2 = vcmp.gt.f32.partialorder %v362_v31, 0.0 }
 0x15f   :  { %v1791_v22 = vpop.eup %1790  ;;  %v420_v23 = vmul.f32 1.442695, %v394_v32 }
 0x160   :  { %v1632_v35 = vadd.f32 -1.0, %v1791_v22  ;;  %v1793_v36 = vpop.eup %1792 }
 0x161   :  { %1794 = vpow2.f32 %v420_v23 }
 0x162   :  { %v307_v37 = vpop.f32.mrf.mxu0  ;;  %v457_v38 = vsel %vm377_vm1, %v361_v13, %v1632_v35  ;;  %1796 = vrcp.f32 %v332_v34  ;;  %v718_v35 = vld [vmem:[%s3247_s2 + $0x18] sm:$0xff] }
 0x163   :  { %v363_v5 = vmul.f32 %v1793_v36, %v307_v37  ;;  %563 = vmatmul.f32.gmra.mxu1 %v457_v38  ;;  %628 = vmatmul.f32.gmra.mxu2 %v457_v38 }
 0x164   :  { %693 = vmatmul.f32.gmra.mxu3 %v457_v38 }
 0x165   :  { %v395_v39 = vmin.f32 %v363_v5, 0.0  ;;  %vm379_vm3 = vcmp.gt.f32.partialorder %v363_v5, 0.0 }
 0x167   :  { %v1795_v40 = vpop.eup %1794  ;;  %v422_v41 = vmul.f32 1.442695, %v395_v39 }
 0x168   :  { %v1633_v43 = vadd.f32 -1.0, %v1795_v40  ;;  %v1797_v44 = vpop.eup %1796 }
 0x169   :  { %1798 = vpow2.f32 %v422_v41 }
 0x16a   :  { %v310_v45 = vpop.f32.mrf.mxu0  ;;  %v458_v46 = vsel %vm378_vm2, %v362_v31, %v1633_v43  ;;  %1800 = vrcp.f32 %v333_v42  ;;  %v719_v42 = vld [vmem:[%s3247_s2 + $0x20] sm:$0xff] }
 0x16b   :  { %v364_v47 = vmul.f32 %v1797_v44, %v310_v45  ;;  %566 = vmatmul.f32.gmra.mxu1 %v458_v46  ;;  %631 = vmatmul.f32.gmra.mxu2 %v458_v46 }
 0x16c   :  { %696 = vmatmul.f32.gmra.mxu3 %v458_v46  ;;  %v721_v46 = vld [vmem:[%s3247_s2 + $0x30] sm:$0xff] }
 0x16d   :  { %v396_v14 = vmin.f32 %v364_v47, 0.0  ;;  %vm380_vm4 = vcmp.gt.f32.partialorder %v364_v47, 0.0 }
 0x16f   :  { %v1799_v48 = vpop.eup %1798  ;;  %v424_v49 = vmul.f32 1.442695, %v396_v14 }
 0x170   :  { %v1634_v51 = vadd.f32 -1.0, %v1799_v48  ;;  %v1801_v52 = vpop.eup %1800 }
 0x171   :  { %1802 = vpow2.f32 %v424_v49 }
 0x172   :  { %v312_v53 = vpop.f32.mrf.mxu0  ;;  %v459_v54 = vsel %vm379_vm3, %v363_v5, %v1634_v51  ;;  %1804 = vrcp.f32 %v334_v50 }
 0x173   :  { %v365_v55 = vmul.f32 %v1801_v52, %v312_v53  ;;  %569 = vmatmul.f32.gmra.mxu1 %v459_v54  ;;  %634 = vmatmul.f32.gmra.mxu2 %v459_v54 }
 0x174   :  { %699 = vmatmul.f32.gmra.mxu3 %v459_v54 }
 0x175   :  { %v397_v16 = vmin.f32 %v365_v55, 0.0  ;;  %vm381_vm5 = vcmp.gt.f32.partialorder %v365_v55, 0.0 }
 0x177   :  { %v1803_v18 = vpop.eup %1802  ;;  %v426_v57 = vmul.f32 1.442695, %v397_v16 }
 0x178   :  { %v1635_v27 = vadd.f32 -1.0, %v1803_v18  ;;  %v1805_v58 = vpop.eup %1804  ;;  %v722_v18 = vld [vmem:[%s3247_s2 + $0x38] sm:$0xff] }
 0x179   :  { %1806 = vpow2.f32 %v426_v57 }
 0x17a   :  { %v315_v59 = vpop.f32.mrf.mxu0  ;;  %v460_v19 = vsel %vm380_vm4, %v364_v47, %v1635_v27  ;;  %1808 = vrcp.f32 %v335_v26 }
 0x17b   :  { %v366_v20 = vmul.f32 %v1805_v58, %v315_v59  ;;  %572 = vmatmul.f32.gmra.mxu1 %v460_v19  ;;  %637 = vmatmul.f32.gmra.mxu2 %v460_v19 }
 0x17c   :  { %702 = vmatmul.f32.gmra.mxu3 %v460_v19 }
 0x17d   :  { %v398_v60 = vmin.f32 %v366_v20, 0.0  ;;  %vm382_vm6 = vcmp.gt.f32.partialorder %v366_v20, 0.0 }
 0x17f   :  { %v1807_v61 = vpop.eup %1806  ;;  %v428_v62 = vmul.f32 1.442695, %v398_v60 }
 0x180   :  { %v1636_v63 = vadd.f32 -1.0, %v1807_v61  ;;  %v1809_v0 = vpop.eup %1808 }
 0x181   :  { %1810 = vpow2.f32 %v428_v62 }
 0x182   :  { %v317_v1 = vpop.f32.mrf.mxu0  ;;  %v461_v2 = vsel %vm381_vm5, %v365_v55, %v1636_v63  ;;  %v2387_v55 = vperm.slane %v512_v24, 2  ;;  %v717_v24 = vld [vmem:[%s3247_s2 + $0x10] sm:$0xff] }
 0x183   :  { %v367_v3 = vmul.f32 %v1809_v0, %v317_v1  ;;  %575 = vmatmul.f32.gmra.mxu1 %v461_v2  ;;  %640 = vmatmul.f32.gmra.mxu2 %v461_v2 }
 0x184   :  { %705 = vmatmul.f32.gmra.mxu3 %v461_v2  ;;  %v724_v2 = vld [vmem:[%s3247_s2 + $0x48] sm:$0xff] }
 0x185   :  { %v399_v6 = vmin.f32 %v367_v3, 0.0  ;;  %vm383_vm7 = vcmp.gt.f32.partialorder %v367_v3, 0.0 }
 0x187   :  { %v1811_v7 = vpop.eup %1810  ;;  %v430_v8 = vmul.f32 1.442695, %v399_v6 }
 0x188   :  { %v1637_v11 = vadd.f32 -1.0, %v1811_v7 }
 0x189   :  { %1812 = vpow2.f32 %v430_v8 }
 0x18a   :  { %v462_v12 = vsel %vm382_vm6, %v366_v20, %v1637_v11 }
 0x18b   :  { %578 = vmatmul.f32.gmra.mxu1 %v462_v12  ;;  %643 = vmatmul.f32.gmra.mxu2 %v462_v12 }
 0x18c   :  { %708 = vmatmul.f32.gmra.mxu3 %v462_v12 }
 0x18f   :  { %v1813_v13 = vpop.eup %1812 }
 0x190   :  { %v1638_v17 = vadd.f32 -1.0, %v1813_v13 }
 0x192   :  { %v463_v21 = vsel %vm383_vm7, %v367_v3, %v1638_v17 }
 0x193   :  { %581 = vmatmul.f32.gmra.mxu1 %v463_v21  ;;  %646 = vmatmul.f32.gmra.mxu2 %v463_v21 }
 0x194   :  { %711 = vmatmul.f32.gmra.mxu3 %v463_v21 }
 0x198   :  { %v537_v28 = vpop.f32.mrf.mxu1 }
 0x199   :  { %v538_v4 = vadd.f32 %v537_v28, %v2360_v25  ;;  %v728_v28 = vld [vmem:[%s3247_s2 + $0x68] sm:$0xff] }
 0x19b   :  { %v779_v9 = vadd.f32 %v715_v29, %v538_v4 }
 0x19d   :  { %v1639_v31 = vmul.f32 -1.442695, %v779_v9 }
 0x19e   :  { %v602_v32 = vpop.f32.mrf.mxu2 }
 0x19f   :  { %1814 = vpow2.f32 %v1639_v31  ;;  %v603_v22 = vadd.f32 %v602_v32, %v2366_v30  ;;  %v667_v23 = vpop.f32.mrf.mxu3 }
 0x1a0   :  { %v540_v34 = vpop.f32.mrf.mxu1  ;;  %v668_v0 = vadd.f32 %v667_v23, %v2387_v55 }
 0x1a1   :  { %v1099_v36 = vadd.f32 %v716_v33, %v603_v22  ;;  %v541_v37 = vadd.f32 %v540_v34, %v2360_v25 }
 0x1a3   :  { %v1655_v38 = vmul.f32 -1.442695, %v1099_v36  ;;  %v780_v5 = vadd.f32 %v718_v35, %v541_v37 }
 0x1a5   :  { %v1815_v10 = vpop.eup %1814  ;;  %1816 = vpow2.f32 %v1655_v38  ;;  %v1640_v39 = vmul.f32 -1.442695, %v780_v5 }
 0x1a6   :  { %v843_v40 = vadd.f32 1.0, %v1815_v10  ;;  %v605_v41 = vpop.f32.mrf.mxu2 }
 0x1a7   :  { %1818 = vpow2.f32 %v1640_v39  ;;  %v606_v43 = vadd.f32 %v605_v41, %v2366_v30  ;;  %v670_v44 = vpop.f32.mrf.mxu3 }
 0x1a8   :  { %1820 = vrcp.f32 %v843_v40  ;;  %v543_v45 = vpop.f32.mrf.mxu1  ;;  %v868_v57 = vand.u32 2147483647, %v843_v40  ;;  %v870_v59 = vand.u32 2147483648, %v843_v40  ;;  %vm864_vm8 = vweird.f32 %v843_v40 }
 0x1a9   :  { %v1100_v47 = vadd.f32 %v719_v42, %v606_v43  ;;  %v544_v14 = vadd.f32 %v543_v45, %v2360_v25  ;;  %v2410_v8 = vadd.f32 %v670_v44, %v2387_v55 }
 0x1aa   :  { %vm2403_vm10 = vcmp.eq.f32.partialorder %v868_v57, 8.507059e+37  ;;  %v871_v21 = vor.u32 1.1754944e-38, %v870_v59 }
 0x1ab   :  { %v1817_v15 = vpop.eup %1816  ;;  %v1656_v48 = vmul.f32 -1.442695, %v1100_v47  ;;  %v781_v49 = vadd.f32 %v721_v46, %v544_v14 }
 0x1ac   :  { %v2384_v50 = vadd.f32 1.0, %v1817_v15 }
 0x1ad   :  { %v1819_v51 = vpop.eup %1818  ;;  %1822 = vpow2.f32 %v1656_v48  ;;  %v1641_v52 = vmul.f32 -1.442695, %v781_v49  ;;  %v725_v48 = vld [vmem:[%s3247_s2 + $0x50] sm:$0xff] }
 0x1ae   :  { %v1821_v53 = vpop.eup %1820  ;;  %1824 = vrcp.f32 %v2384_v50  ;;  %v608_v54 = vpop.f32.mrf.mxu2  ;;  %v2389_v16 = vadd.f32 1.0, %v1819_v51  ;;  %v1190_v19 = vand.u32 2147483648, %v2384_v50  ;;  %v1188_v20 = vand.u32 2147483647, %v2384_v50 }
 0x1af   :  { %v860_v56 = vmul.f32 %v1821_v53, %v843_v40  ;;  %1826 = vpow2.f32 %v1641_v52  ;;  %v609_v26 = vadd.f32 %v608_v54, %v2366_v30  ;;  %v673_v61 = vpop.f32.mrf.mxu3  ;;  %vm865_vm9 = vweird.f32 %v1821_v53 }
 0x1b0   :  { %v546_v27 = vpop.f32.mrf.mxu1  ;;  %1828 = vrcp.f32 %v2389_v16  ;;  %vm1184_vm11 = vweird.f32 %v2384_v50  ;;  %vm866_vm12 = vmor %vm864_vm8, %vm865_vm9  ;;  %vm2417_vm13 = vcmp.eq.f32.partialorder %v1188_v20, 8.507059e+37  ;;  %v1191_v29 = vor.u32 1.1754944e-38, %v1190_v19 }
 0x1b1   :  { %v861_v58 = vsub.f32 1.0, %v860_v56  ;;  %v1101_v60 = vadd.f32 %v722_v18, %v609_v26  ;;  %v547_v62 = vadd.f32 %v546_v27, %v2360_v25  ;;  %v2423_v4 = vadd.f32 %v673_v61, %v2387_v55 }
 0x1b2   :  { %v883_v36 = vand.u32 2147483647, %v2389_v16  ;;  %v885_v37 = vand.u32 2147483648, %v2389_v16  ;;  %vm879_vm15 = vweird.f32 %v2389_v16 }
 0x1b3   :  { %v1823_v63 = vpop.eup %1822  ;;  %v862_v1 = vmul.f32 %v1821_v53, %v861_v58  ;;  %v1657_v11 = vmul.f32 -1.442695, %v1101_v60  ;;  %v782_v9 = vadd.f32 %v724_v2, %v547_v62  ;;  %v720_v58 = vld [vmem:[%s3247_s2 + $0x28] sm:$0xff]  ;;  %v763_v62 = vld [vmem:[%s3248_s3] sm:$0xff] }
 0x1b4   :  { %v1825_v3 = vpop.eup %1824  ;;  %v2407_v7 = vadd.f32 1.0, %v1823_v63  ;;  %vm2445_vm2 = vcmp.eq.f32.partialorder %v883_v36, 8.507059e+37  ;;  %v886_v15 = vor.u32 1.1754944e-38, %v885_v37 }
 0x1b5   :  { %v1827_v12 = vpop.eup %1826  ;;  %v1180_v13 = vmul.f32 %v1825_v3, %v2384_v50  ;;  %v863_v17 = vadd.f32 %v1821_v53, %v862_v1  ;;  %vm1185_vm14 = vweird.f32 %v1825_v3  ;;  %v1642_v43 = vmul.f32 -1.442695, %v782_v9 }
 0x1b6   :  { %1830 = vrcp.f32 %v2407_v7  ;;  %v611_v31 = vpop.f32.mrf.mxu2  ;;  %v1829_v32 = vpop.eup %1828  ;;  %v2425_v23 = vadd.f32 1.0, %v1827_v12  ;;  %v1205_v10 = vand.u32 2147483648, %v2407_v7  ;;  %v1203_v40 = vand.u32 2147483647, %v2407_v7  ;;  %vm2441_vm0 = vmor %vm1184_vm11, %vm1185_vm14 }
 0x1b7   :  { %v1181_v33 = vsub.f32 1.0, %v1180_v13  ;;  %v867_v22 = vsel %vm866_vm12, %v1821_v53, %v863_v17  ;;  %1832 = vpow2.f32 %v1657_v11  ;;  %v875_v35 = vmul.f32 %v1829_v32, %v2389_v16  ;;  %v2452_v49 = vpop.f32.mrf.mxu3 }
 0x1b8   :  { %v872_v34 = vsel %vm2403_vm10, %v871_v21, %v867_v22  ;;  %1834 = vrcp.f32 %v2425_v23  ;;  %v612_v44 = vadd.f32 %v611_v31, %v2366_v30  ;;  %vm880_vm1 = vweird.f32 %v1829_v32  ;;  %v549_v18 = vpop.f32.mrf.mxu1  ;;  %v727_v21 = vld [vmem:[%s3247_s2 + $0x60] sm:$0xff] }
 0x1b9   :  { %v1182_v38 = vmul.f32 %v1825_v3, %v1181_v33  ;;  %v1419_v5 = vmul.f32 %v872_v34, %v717_v24  ;;  %v876_v39 = vsub.f32 1.0, %v875_v35  ;;  %vm1199_vm3 = vweird.f32 %v2407_v7  ;;  %vm881_vm5 = vmor %vm879_vm15, %vm880_vm1 }
 0x1ba   :  { %vm2459_vm4 = vcmp.eq.f32.partialorder %v1203_v40, 8.507059e+37  ;;  %v1206_v59 = vor.u32 1.1754944e-38, %v1205_v10  ;;  %v1102_v19 = vadd.f32 %v725_v48, %v612_v44  ;;  %vm894_vm6 = vweird.f32 %v2425_v23 }
 0x1bb   :  { %v1183_v41 = vadd.f32 %v1825_v3, %v1182_v38  ;;  %v1435_v42 = vadd.f32 %v1419_v5, %v668_v0  ;;  %v877_v47 = vmul.f32 %v1829_v32, %v876_v39  ;;  %v898_v61 = vand.u32 2147483647, %v2425_v23 }
 0x1bc   :  { %v2437_v45 = vpop.eup %1830  ;;  %v1658_v6 = vmul.f32 -1.442695, %v1102_v19  ;;  %v550_v17 = vadd.f32 %v549_v18, %v2360_v25 }
 0x1bd   :  { %v1833_v51 = vpop.eup %1832  ;;  %v1187_v50 = vsel %vm2441_vm0, %v1825_v3, %v1183_v41  ;;  %1836 = vtanh.f32 %v1435_v42  ;;  %v1195_v52 = vmul.f32 %v2437_v45, %v2407_v7  ;;  %v878_v53 = vadd.f32 %v1829_v32, %v877_v47  ;;  %v723_v42 = vld [vmem:[%s3247_s2 + $0x40] sm:$0xff] }
 0x1be   :  { %v2463_v56 = vadd.f32 1.0, %v1833_v51  ;;  %1838 = vpow2.f32 %v1642_v43  ;;  %v2465_v57 = vpop.eup %1834  ;;  %v1192_v26 = vsel %vm2417_vm13, %v1191_v29, %v1187_v50  ;;  %v614_v20 = vpop.f32.mrf.mxu2  ;;  %vm1200_vm7 = vweird.f32 %v2437_v45 }
 0x1bf   :  { %v1196_v27 = vsub.f32 1.0, %v1195_v52  ;;  %v882_v60 = vsel %vm881_vm5, %v1829_v32, %v878_v53  ;;  %v890_v0 = vmul.f32 %v2465_v57, %v2425_v23  ;;  %v1467_v1 = vsub.f32 1.0, %v1192_v26  ;;  %vm1201_vm8 = vmor %vm1199_vm3, %vm1200_vm7  ;;  %v2507_v5 = vpop.f32.mrf.mxu3 }
 0x1c0   :  { %1840 = vrcp.f32 %v2463_v56  ;;  %v887_v16 = vsel %vm2445_vm2, %v886_v15, %v882_v60  ;;  %v900_v3 = vand.u32 2147483648, %v2425_v23  ;;  %v615_v24 = vadd.f32 %v614_v20, %v2366_v30  ;;  %v552_v44 = vpop.f32.mrf.mxu1 }
 0x1c1   :  { %v1197_v63 = vmul.f32 %v2437_v45, %v1196_v27  ;;  %v1420_v2 = vmul.f32 %v887_v16, %v720_v58  ;;  %v891_v13 = vsub.f32 1.0, %v890_v0  ;;  %v1499_v31 = vmul.f32 %v1192_v26, %v763_v62 }
 0x1c2   :  { %1842 = vpow2.f32 %v1658_v6  ;;  %vm895_vm9 = vweird.f32 %v2465_v57  ;;  %v783_v37 = vadd.f32 %v727_v21, %v550_v17  ;;  %v1103_v38 = vadd.f32 %v728_v28, %v615_v24  ;;  %v766_v17 = vld [vmem:[%s3248_s3 + $0x18] sm:$0xff] }
 0x1c3   :  { %v1837_v11 = vpop.eup %1836  ;;  %v1198_v12 = vadd.f32 %v2437_v45, %v1197_v63  ;;  %v1436_v32 = vadd.f32 %v1420_v2, %v2410_v8  ;;  %v892_v22 = vmul.f32 %v2465_v57, %v891_v13  ;;  %vm2513_vm10 = vcmp.eq.f32.partialorder %v898_v61, 8.507059e+37  ;;  %vm896_vm11 = vmor %vm894_vm6, %vm895_vm9  ;;  %v765_v13 = vld [vmem:[%s3248_s3 + $0x10] sm:$0xff] }
 0x1c4   :  { %v1839_v29 = vpop.eup %1838  ;;  %v1483_v9 = vmul.f32 %v1837_v11, %v1467_v1  ;;  %v1220_v41 = vand.u32 2147483648, %v2463_v56  ;;  %v901_v43 = vor.u32 1.1754944e-38, %v900_v3  ;;  %vm1214_vm12 = vweird.f32 %v2463_v56 }
 0x1c5   :  { %v1202_v33 = vsel %vm1201_vm8, %v2437_v45, %v1198_v12  ;;  %v2505_v34 = vadd.f32 1.0, %v1839_v29  ;;  %1844 = vtanh.f32 %v1436_v32  ;;  %v893_v10 = vadd.f32 %v2465_v57, %v892_v22  ;;  %v764_v45 = vld [vmem:[%s3248_s3 + $0x8] sm:$0xff] }
 0x1c6   :  { %v1841_v35 = vpop.eup %1840  ;;  %v1515_v36 = vadd.f32 %v1499_v31, %v1483_v9  ;;  %v1207_v7 = vsel %vm2459_vm4, %v1206_v59, %v1202_v33  ;;  %v1218_v14 = vand.u32 2147483647, %v2463_v56  ;;  %v617_v15 = vpop.f32.mrf.mxu2  ;;  %v1643_v50 = vmul.f32 -1.442695, %v783_v37 }
 0x1c7   :  { %v1210_v8 = vmul.f32 %v1841_v35, %v2463_v56  ;;  %1846 = vrcp.f32 %v2505_v34  ;;  %v897_v47 = vsel %vm896_vm11, %v2465_v57, %v893_v10  ;;  %v1468_v23 = vsub.f32 1.0, %v1207_v7  ;;  %v731_v56 = vld [vmem:[%s3247_s2 + $0x80] sm:$0xff]  ;;  %v2554_v2 = vpop.f32.mrf.mxu3 }
 0x1c8   :  { %v1531_v40 = vmax.f32 %v1515_v36, 0.0  ;;  %v1843_v48 = vpop.eup %1842  ;;  %v902_v51 = vsel %vm2513_vm10, %v901_v43, %v897_v47  ;;  %v1659_v52 = vmul.f32 -1.442695, %v1103_v38  ;;  %vm1215_vm13 = vweird.f32 %v1841_v35  ;;  %v555_v28 = vpop.f32.mrf.mxu1  ;;  %v733_v47 = vld [vmem:[%s3247_s2 + $0x90] sm:$0xff] }
 0x1c9   :  { %v1211_v46 = vsub.f32 1.0, %v1210_v8  ;;  %v1421_v54 = vmul.f32 %v902_v51, %v723_v42  ;;  %v2537_v18 = vadd.f32 1.0, %v1843_v48  ;;  %v1500_v26 = vmul.f32 %v1207_v7, %v764_v45  ;;  %vm1216_vm14 = vmor %vm1214_vm12, %vm1215_vm13  ;;  %v726_v42 = vld [vmem:[%s3247_s2 + $0x58] sm:$0xff] }
 0x1ca   :  { %1547 = vst [vmem:[%s3249_s6] sm:$0xff] %v1531_v40  ;;  %v1221_v27 = vor.u32 1.1754944e-38, %v1220_v41  ;;  %v913_v58 = vand.u32 2147483647, %v2505_v34  ;;  %1848 = vpow2.f32 %v1643_v50  ;;  %v915_v61 = vand.u32 2147483648, %v2505_v34 }
 0x1cb   :  { %v1212_v53 = vmul.f32 %v1841_v35, %v1211_v46  ;;  %v1845_v57 = vpop.eup %1844  ;;  %v1437_v20 = vadd.f32 %v1421_v54, %v2423_v4  ;;  %1850 = vrcp.f32 %v2537_v18  ;;  %v553_v62 = vadd.f32 %v552_v44, %v2360_v25  ;;  %v730_v4 = vld [vmem:[%s3247_s2 + $0x78] sm:$0xff] }
 0x1cc   :  { %v1484_v59 = vmul.f32 %v1845_v57, %v1468_v23  ;;  %1852 = vpow2.f32 %v1659_v52  ;;  %v618_v63 = vadd.f32 %v617_v15, %v2366_v30  ;;  %vm1219_vm15 = vcmp.eq.f32.partialorder %v1218_v14, 8.507059e+37  ;;  %v734_v23 = vld [vmem:[%s3247_s2 + $0x98] sm:$0xff] }
 0x1cd   :  { %v1213_v19 = vadd.f32 %v1841_v35, %v1212_v53  ;;  %v1847_v60 = vpop.eup %1846  ;;  %1854 = vtanh.f32 %v1437_v20  ;;  %vm909_vm0 = vweird.f32 %v2505_v34  ;;  %vm2560_vm1 = vcmp.eq.f32.partialorder %v913_v58, 8.507059e+37 }
 0x1ce   :  { %v1516_v16 = vadd.f32 %v1500_v26, %v1484_v59  ;;  %v905_v1 = vmul.f32 %v1847_v60, %v2505_v34  ;;  %v916_v21 = vor.u32 1.1754944e-38, %v915_v61  ;;  %v784_v24 = vadd.f32 %v730_v4, %v553_v62  ;;  %v620_v33 = vpop.f32.mrf.mxu2 }
 0x1cf   :  { %v1217_v0 = vsel %vm1216_vm14, %v1841_v35, %v1213_v19  ;;  %vm910_vm2 = vweird.f32 %v1847_v60  ;;  %v1104_v32 = vadd.f32 %v731_v56, %v618_v63  ;;  %v1235_v37 = vand.u32 2147483648, %v2537_v18  ;;  %v685_v26 = vpop.f32.mrf.mxu3 }
 0x1d0   :  { %v1532_v3 = vmax.f32 %v1516_v16, 0.0  ;;  %v1222_v6 = vsel %vm1219_vm15, %v1221_v27, %v1217_v0  ;;  %v906_v11 = vsub.f32 1.0, %v905_v1  ;;  %v1849_v12 = vpop.eup %1848  ;;  %v1233_v38 = vand.u32 2147483647, %v2537_v18  ;;  %vm911_vm3 = vmor %vm909_vm0, %vm910_vm2  ;;  %v558_v61 = vpop.f32.mrf.mxu1 }
 0x1d1   :  { %v2564_v29 = vpop.eup %1850  ;;  %v2569_v31 = vadd.f32 1.0, %v1849_v12  ;;  %v1469_v35 = vsub.f32 1.0, %v1222_v6  ;;  %v1501_v8 = vmul.f32 %v1222_v6, %v765_v13  ;;  %v1644_v43 = vmul.f32 -1.442695, %v784_v24 }
 0x1d2   :  { %1548 = vst [vmem:[%s3249_s6 + $0x8] sm:$0xff] %v1532_v3  ;;  %v907_v9 = vmul.f32 %v1847_v60, %v906_v11  ;;  %v1853_v22 = vpop.eup %1852  ;;  %v1225_v36 = vmul.f32 %v2564_v29, %v2537_v18  ;;  %v556_v44 = vadd.f32 %v555_v28, %v2360_v25  ;;  %v1660_v46 = vmul.f32 -1.442695, %v1104_v32 }
 0x1d3   :  { %v1855_v7 = vpop.eup %1854  ;;  %1856 = vrcp.f32 %v2569_v31  ;;  %v2576_v39 = vadd.f32 1.0, %v1853_v22  ;;  %v621_v14 = vadd.f32 %v620_v33, %v2366_v30  ;;  %vm1230_vm4 = vweird.f32 %v2564_v29 }
 0x1d4   :  { %v908_v10 = vadd.f32 %v1847_v60, %v907_v9  ;;  %v1485_v40 = vmul.f32 %v1855_v7, %v1469_v35  ;;  %v1226_v41 = vsub.f32 1.0, %v1225_v36  ;;  %vm1229_vm5 = vweird.f32 %v2537_v18 }
 0x1d5   :  { %1858 = vrcp.f32 %v2576_v39  ;;  %v677_v51 = vadd.f32 %v2452_v49, %v2387_v55  ;;  %v2602_v52 = vadd.f32 %v2507_v5, %v2387_v55  ;;  %v785_v57 = vadd.f32 %v733_v47, %v556_v44  ;;  %vm2605_vm6 = vmor %vm1229_vm5, %vm1230_vm4 }
 0x1d6   :  { %v912_v45 = vsel %vm911_vm3, %v1847_v60, %v908_v10  ;;  %v1517_v15 = vadd.f32 %v1501_v8, %v1485_v40  ;;  %v1227_v48 = vmul.f32 %v2564_v29, %v1226_v41  ;;  %1860 = vpow2.f32 %v1644_v43  ;;  %v623_v1 = vpop.f32.mrf.mxu2  ;;  %v729_v8 = vld [vmem:[%s3247_s2 + $0x70] sm:$0xff] }
 0x1d7   :  { %v917_v34 = vsel %vm2560_vm1, %v916_v21, %v912_v45  ;;  %vm2609_vm7 = vcmp.eq.f32.partialorder %v1233_v38, 8.507059e+37  ;;  %1862 = vpow2.f32 %v1660_v46  ;;  %v1105_v59 = vadd.f32 %v734_v23, %v621_v14  ;;  %v688_v43 = vpop.f32.mrf.mxu3 }
 0x1d8   :  { %v1422_v50 = vmul.f32 %v917_v34, %v726_v42  ;;  %v1533_v53 = vmax.f32 %v1517_v15, 0.0  ;;  %v1228_v54 = vadd.f32 %v2564_v29, %v1227_v48  ;;  %v1236_v19 = vor.u32 1.1754944e-38, %v1235_v37 }
 0x1d9   :  { %v1857_v27 = vpop.eup %1856  ;;  %v1645_v60 = vmul.f32 -1.442695, %v785_v57  ;;  %v928_v63 = vand.u32 2147483647, %v2569_v31  ;;  %v930_v16 = vand.u32 2147483648, %v2569_v31  ;;  %vm924_vm8 = vweird.f32 %v2569_v31  ;;  %v561_v57 = vpop.f32.mrf.mxu1 }
 0x1da   :  { %v1438_v49 = vadd.f32 %v1422_v50, %v677_v51  ;;  %1549 = vst [vmem:[%s3249_s6 + $0x10] sm:$0xff] %v1533_v53  ;;  %v1232_v5 = vsel %vm2605_vm6, %v2564_v29, %v1228_v54  ;;  %v920_v20 = vmul.f32 %v1857_v27, %v2569_v31  ;;  %v1661_v0 = vmul.f32 -1.442695, %v1105_v59 }
 0x1db   :  { %v2620_v62 = vpop.eup %1858  ;;  %v2629_v3 = vadd.f32 %v2554_v2, %v2387_v55  ;;  %v1237_v6 = vsel %vm2609_vm7, %v1236_v19, %v1232_v5  ;;  %v1250_v11 = vand.u32 2147483648, %v2576_v39  ;;  %v559_v12 = vadd.f32 %v558_v61, %v2360_v25  ;;  %v736_v2 = vld [vmem:[%s3247_s2 + $0xa8] sm:$0xff] }
 0x1dc   :  { %1864 = vtanh.f32 %v1438_v49  ;;  %v1240_v4 = vmul.f32 %v2620_v62, %v2576_v39  ;;  %v921_v56 = vsub.f32 1.0, %v920_v20  ;;  %v1861_v13 = vpop.eup %1860  ;;  %vm925_vm9 = vweird.f32 %v1857_v27 }
 0x1dd   :  { %1866 = vpow2.f32 %v1645_v60  ;;  %v1863_v28 = vpop.eup %1862  ;;  %vm2641_vm10 = vcmp.eq.f32.partialorder %v928_v63, 8.507059e+37  ;;  %v931_v9 = vor.u32 1.1754944e-38, %v930_v16  ;;  %v1248_v32 = vand.u32 2147483647, %v2576_v39  ;;  %vm926_vm11 = vmor %vm924_vm8, %vm925_vm9 }
 0x1de   :  { %v1241_v21 = vsub.f32 1.0, %v1240_v4  ;;  %v922_v24 = vmul.f32 %v1857_v27, %v921_v56  ;;  %1868 = vpow2.f32 %v1661_v0  ;;  %v2646_v33 = vadd.f32 1.0, %v1861_v13  ;;  %v739_v0 = vld [vmem:[%s3247_s2 + $0xc0] sm:$0xff] }
 0x1df   :  { %v1470_v22 = vsub.f32 1.0, %v1237_v6  ;;  %v2649_v37 = vadd.f32 1.0, %v1863_v28  ;;  %v1502_v7 = vmul.f32 %v1237_v6, %v766_v17  ;;  %vm1245_vm12 = vweird.f32 %v2620_v62 }
 0x1e0   :  { %v1242_v35 = vmul.f32 %v2620_v62, %v1241_v21  ;;  %v923_v36 = vadd.f32 %v1857_v27, %v922_v24  ;;  %1870 = vrcp.f32 %v2646_v33  ;;  %v786_v10 = vadd.f32 %v736_v2, %v559_v12 }
 0x1e1   :  { %1872 = vrcp.f32 %v2649_v37  ;;  %vm1244_vm13 = vweird.f32 %v2576_v39  ;;  %v2665_v31 = vadd.f32 %v685_v26, %v2387_v55  ;;  %v624_v46 = vadd.f32 %v623_v1, %v2366_v30  ;;  %v737_v39 = vld [vmem:[%s3247_s2 + $0xb0] sm:$0xff]  ;;  %v626_v26 = vpop.f32.mrf.mxu2  ;;  %v767_v1 = vld [vmem:[%s3248_s3 + $0x20] sm:$0xff]  ;;  %v564_v23 = vpop.f32.mrf.mxu1 }
 0x1e2   :  { %v1865_v38 = vpop.eup %1864  ;;  %v927_v41 = vsel %vm926_vm11, %v1857_v27, %v923_v36  ;;  %v1243_v42 = vadd.f32 %v2620_v62, %v1242_v35  ;;  %vm2668_vm14 = vcmp.eq.f32.partialorder %v1248_v32, 8.507059e+37  ;;  %v1251_v48 = vor.u32 1.1754944e-38, %v1250_v11  ;;  %vm2677_vm15 = vmor %vm1244_vm13, %vm1245_vm12  ;;  %v740_v32 = vld [vmem:[%s3247_s2 + $0xc8] sm:$0xff] }
 0x1e3   :  { %v1486_v40 = vmul.f32 %v1865_v38, %v1470_v22  ;;  %v1867_v44 = vpop.eup %1866  ;;  %v932_v45 = vsel %vm2641_vm10, %v931_v9, %v927_v41  ;;  %v943_v51 = vand.u32 2147483647, %v2646_v33  ;;  %v1646_v53 = vmul.f32 -1.442695, %v786_v10 }
 0x1e4   :  { %v1869_v47 = vpop.eup %1868  ;;  %v1423_v34 = vmul.f32 %v932_v45, %v729_v8  ;;  %v2682_v50 = vadd.f32 1.0, %v1867_v44  ;;  %v2685_v54 = vadd.f32 %v688_v43, %v2387_v55  ;;  %v1247_v58 = vsel %vm2677_vm15, %v2620_v62, %v1243_v42 }
 0x1e5   :  { %v1518_v14 = vadd.f32 %v1502_v7, %v1486_v40  ;;  %v945_v49 = vand.u32 2147483648, %v2646_v33  ;;  %v1265_v5 = vand.u32 2147483648, %v2649_v37  ;;  %v2694_v19 = vadd.f32 1.0, %v1869_v47  ;;  %v732_v40 = vld [vmem:[%s3247_s2 + $0x88] sm:$0xff] }
 0x1e6   :  { %v1439_v18 = vadd.f32 %v1423_v34, %v2602_v52  ;;  %v1871_v59 = vpop.eup %1870  ;;  %1874 = vrcp.f32 %v2682_v50  ;;  %v1106_v20 = vadd.f32 %v737_v39, %v624_v46  ;;  %v562_v52 = vadd.f32 %v561_v57, %v2360_v25  ;;  %v745_v57 = vld [vmem:[%s3247_s2 + $0xf0] sm:$0xff] }
 0x1e7   :  { %v1534_v27 = vmax.f32 %v1518_v14, 0.0  ;;  %v2696_v60 = vpop.eup %1872  ;;  %v935_v61 = vmul.f32 %v1871_v59, %v2646_v33  ;;  %v627_v62 = vadd.f32 %v626_v26, %v2366_v30  ;;  %v1252_v63 = vsel %vm2668_vm14, %v1251_v48, %v1247_v58 }
 0x1e8   :  { %1876 = vtanh.f32 %v1439_v18  ;;  %v1255_v16 = vmul.f32 %v2696_v60, %v2649_v37  ;;  %vm939_vm0 = vweird.f32 %v2646_v33  ;;  %vm2716_vm1 = vcmp.eq.f32.partialorder %v943_v51, 8.507059e+37 }
 0x1e9   :  { %1550 = vst [vmem:[%s3249_s6 + $0x18] sm:$0xff] %v1534_v27  ;;  %1878 = vrcp.f32 %v2694_v19  ;;  %v936_v4 = vsub.f32 1.0, %v935_v61  ;;  %v946_v6 = vor.u32 1.1754944e-38, %v945_v49  ;;  %v1263_v11 = vand.u32 2147483647, %v2649_v37  ;;  %v735_v61 = vld [vmem:[%s3247_s2 + $0xa0] sm:$0xff] }
 0x1ea   :  { %v1256_v12 = vsub.f32 1.0, %v1255_v16  ;;  %vm1259_vm2 = vweird.f32 %v2649_v37  ;;  %v2722_v13 = vor.u32 1.1754944e-38, %v1265_v5  ;;  %1880 = vpow2.f32 %v1646_v53 }
 0x1eb   :  { %v1662_v17 = vmul.f32 -1.442695, %v1106_v20  ;;  %v1471_v21 = vsub.f32 1.0, %v1252_v63  ;;  %v937_v24 = vmul.f32 %v1871_v59, %v936_v4  ;;  %vm940_vm3 = vweird.f32 %v1871_v59 }
 0x1ec   :  { %v787_v2 = vadd.f32 %v739_v0, %v562_v52  ;;  %v1875_v28 = vpop.eup %1874  ;;  %v1503_v29 = vmul.f32 %v1252_v63, %v767_v1  ;;  %v1257_v9 = vmul.f32 %v2696_v60, %v1256_v12  ;;  %vm954_vm4 = vweird.f32 %v2682_v50  ;;  %vm941_vm5 = vmor %vm939_vm0, %vm940_vm3  ;;  %v629_v0 = vpop.f32.mrf.mxu2  ;;  %v768_v1 = vld [vmem:[%s3248_s3 + $0x28] sm:$0xff] }
 0x1ed   :  { %1882 = vpow2.f32 %v1662_v17  ;;  %v938_v35 = vadd.f32 %v1871_v59, %v937_v24  ;;  %v950_v36 = vmul.f32 %v1875_v28, %v2682_v50  ;;  %v958_v38 = vand.u32 2147483647, %v2682_v50 }
 0x1ee   :  { %v1877_v22 = vpop.eup %1876  ;;  %v1647_v7 = vmul.f32 -1.442695, %v787_v2  ;;  %vm1260_vm6 = vweird.f32 %v2696_v60  ;;  %v1280_v41 = vand.u32 2147483648, %v2694_v19  ;;  %v960_v42 = vand.u32 2147483648, %v2682_v50 }
 0x1ef   :  { %v2731_v8 = vpop.eup %1878  ;;  %v1487_v10 = vmul.f32 %v1877_v22, %v1471_v21  ;;  %v942_v43 = vsel %vm941_vm5, %v1871_v59, %v938_v35  ;;  %v951_v45 = vsub.f32 1.0, %v950_v36  ;;  %v1107_v46 = vadd.f32 %v740_v32, %v627_v62  ;;  %vm2758_vm9 = vmor %vm1259_vm2, %vm1260_vm6  ;;  %v742_v32 = vld [vmem:[%s3247_s2 + $0xd8] sm:$0xff] }
 0x1f0   :  { %v1270_v44 = vmul.f32 %v2731_v8, %v2694_v19  ;;  %v1881_v47 = vpop.eup %1880  ;;  %v947_v15 = vsel %vm2716_vm1, %v946_v6, %v942_v43  ;;  %v1258_v33 = vadd.f32 %v2696_v60, %v1257_v9  ;;  %1884 = vpow2.f32 %v1647_v7  ;;  %v743_v7 = vld [vmem:[%s3247_s2 + $0xe0] sm:$0xff] }
 0x1f1   :  { %v1519_v14 = vadd.f32 %v1503_v29, %v1487_v10  ;;  %v1424_v48 = vmul.f32 %v947_v15, %v732_v40  ;;  %v952_v39 = vmul.f32 %v1875_v28, %v951_v45  ;;  %vm955_vm7 = vweird.f32 %v1875_v28 }
 0x1f2   :  { %v1271_v34 = vsub.f32 1.0, %v1270_v44  ;;  %vm2747_vm8 = vcmp.eq.f32.partialorder %v958_v38, 8.507059e+37  ;;  %v1278_v26 = vand.u32 2147483647, %v2694_v19  ;;  %v2752_v27 = vadd.f32 1.0, %v1881_v47  ;;  %vm956_vm10 = vmor %vm954_vm4, %vm955_vm7  ;;  %v769_v44 = vld [vmem:[%s3248_s3 + $0x30] sm:$0xff] }
 0x1f3   :  { %v1883_v51 = vpop.eup %1882  ;;  %v1535_v53 = vmax.f32 %v1519_v14, 0.0  ;;  %v1440_v18 = vadd.f32 %v1424_v48, %v2629_v3  ;;  %v953_v59 = vadd.f32 %v1875_v28, %v952_v39  ;;  %v1262_v20 = vsel %vm2758_vm9, %v2696_v60, %v1258_v33  ;;  %v691_v60 = vpop.f32.mrf.mxu3 }
 0x1f4   :  { %v1272_v49 = vmul.f32 %v2731_v8, %v1271_v34  ;;  %v2764_v5 = vadd.f32 1.0, %v1883_v51  ;;  %v961_v3 = vor.u32 1.1754944e-38, %v960_v42  ;;  %1886 = vrcp.f32 %v2752_v27 }
 0x1f5   :  { %1551 = vst [vmem:[%s3249_s6 + $0x20] sm:$0xff] %v1535_v53  ;;  %v1663_v52 = vmul.f32 -1.442695, %v1107_v46  ;;  %1888 = vtanh.f32 %v1440_v18  ;;  %v957_v62 = vsel %vm956_vm10, %v1875_v28, %v953_v59  ;;  %vm1275_vm11 = vweird.f32 %v2731_v8 }
 0x1f6   :  { %v1273_v63 = vadd.f32 %v2731_v8, %v1272_v49  ;;  %v1885_v16 = vpop.eup %1884  ;;  %vm1264_vm12 = vcmp.eq.f32.partialorder %v1263_v11, 8.507059e+37  ;;  %vm1274_vm13 = vweird.f32 %v2694_v19  ;;  %v962_v50 = vsel %vm2747_vm8, %v961_v3, %v957_v62  ;;  %v746_v19 = vld [vmem:[%s3247_s2 + $0xf8] sm:$0xff] }
 0x1f7   :  { %1890 = vrcp.f32 %v2764_v5  ;;  %v1267_v4 = vsel %vm1264_vm12, %v2722_v13, %v1262_v20  ;;  %v1425_v56 = vmul.f32 %v962_v50, %v735_v61  ;;  %v973_v6 = vand.u32 2147483647, %v2752_v27  ;;  %vm2793_vm14 = vmor %vm1274_vm13, %vm1275_vm11  ;;  %v632_v20 = vpop.f32.mrf.mxu2 }
 0x1f8   :  { %v975_v37 = vand.u32 2147483648, %v2752_v27  ;;  %vm2797_vm15 = vcmp.eq.f32.partialorder %v1278_v26, 8.507059e+37  ;;  %v1281_v12 = vor.u32 1.1754944e-38, %v1280_v41  ;;  %v2801_v17 = vadd.f32 1.0, %v1885_v16  ;;  %v738_v16 = vld [vmem:[%s3247_s2 + $0xb8] sm:$0xff] }
 0x1f9   :  { %1892 = vpow2.f32 %v1663_v52  ;;  %v1277_v13 = vsel %vm2793_vm14, %v2731_v8, %v1273_v63  ;;  %v1441_v21 = vadd.f32 %v1425_v56, %v2665_v31  ;;  %v1295_v24 = vand.u32 2147483648, %v2764_v5  ;;  %v567_v8 = vpop.f32.mrf.mxu1 }
 0x1fa   :  { %v2809_v2 = vadd.f32 %v691_v60, %v2387_v55  ;;  %v1887_v28 = vpop.eup %1886  ;;  %v1472_v29 = vsub.f32 1.0, %v1267_v4  ;;  %v1504_v9 = vmul.f32 %v1267_v4, %v768_v1  ;;  %vm969_vm0 = vweird.f32 %v2752_v27 }
 0x1fb   :  { %1894 = vrcp.f32 %v2801_v17  ;;  %v1889_v22 = vpop.eup %1888  ;;  %v965_v31 = vmul.f32 %v1887_v28, %v2752_v27  ;;  %vm2817_vm1 = vcmp.eq.f32.partialorder %v973_v6, 8.507059e+37  ;;  %v976_v36 = vor.u32 1.1754944e-38, %v975_v37 }
 0x1fc   :  { %1896 = vtanh.f32 %v1441_v21  ;;  %v565_v38 = vadd.f32 %v564_v23, %v2360_v25  ;;  %v1488_v40 = vmul.f32 %v1889_v22, %v1472_v29  ;;  %v1282_v41 = vsel %vm2797_vm15, %v1281_v12, %v1277_v13 }
 0x1fd   :  { %v2825_v10 = vpop.eup %1890  ;;  %v1293_v42 = vand.u32 2147483647, %v2764_v5  ;;  %v630_v43 = vadd.f32 %v629_v0, %v2366_v30  ;;  %vm1289_vm2 = vweird.f32 %v2764_v5  ;;  %v966_v46 = vsub.f32 1.0, %v965_v31 }
 0x1fe   :  { %v1285_v45 = vmul.f32 %v2825_v10, %v2764_v5  ;;  %v2837_v47 = vor.u32 1.1754944e-38, %v1295_v24  ;;  %v788_v14 = vadd.f32 %v742_v32, %v565_v38  ;;  %v1520_v33 = vadd.f32 %v1504_v9, %v1488_v40  ;;  %v741_v40 = vld [vmem:[%s3247_s2 + $0xd0] sm:$0xff] }
 0x1ff   :  { %v1893_v15 = vpop.eup %1892  ;;  %vm970_vm3 = vweird.f32 %v1887_v28  ;;  %v1108_v48 = vadd.f32 %v743_v7, %v630_v43  ;;  %v568_v34 = vadd.f32 %v567_v8, %v2360_v25  ;;  %v967_v23 = vmul.f32 %v1887_v28, %v966_v46  ;;  %v748_v8 = vld [vmem:[%s3247_s2 + $0x108] sm:$0xff] }
 0x200   :  { %v1286_v39 = vsub.f32 1.0, %v1285_v45  ;;  %v2840_v51 = vadd.f32 1.0, %v1893_v15  ;;  %v1648_v53 = vmul.f32 -1.442695, %v788_v14  ;;  %v1536_v58 = vmax.f32 %v1520_v33, 0.0  ;;  %vm971_vm4 = vmor %vm969_vm0, %vm970_vm3  ;;  %v770_v33 = vld [vmem:[%s3248_s3 + $0x38] sm:$0xff] }
 0x201   :  { %v2845_v26 = vpop.eup %1894  ;;  %v1473_v18 = vsub.f32 1.0, %v1282_v41  ;;  %v1505_v49 = vmul.f32 %v1282_v41, %v769_v44  ;;  %v988_v59 = vand.u32 2147483647, %v2801_v17  ;;  %v968_v52 = vadd.f32 %v1887_v28, %v967_v23  ;;  %v570_v9 = vpop.f32.mrf.mxu1 }
 0x202   :  { %v1897_v61 = vpop.eup %1896  ;;  %v1287_v3 = vmul.f32 %v2825_v10, %v1286_v39  ;;  %1898 = vrcp.f32 %v2840_v51  ;;  %v1664_v62 = vmul.f32 -1.442695, %v1108_v48  ;;  %1552 = vst [vmem:[%s3249_s6 + $0x28] sm:$0xff] %v1536_v58  ;;  %vm1290_vm5 = vweird.f32 %v2825_v10  ;;  %v635_v39 = vpop.f32.mrf.mxu2 }
 0x203   :  { %v1489_v63 = vmul.f32 %v1897_v61, %v1473_v18  ;;  %v980_v50 = vmul.f32 %v2845_v26, %v2801_v17  ;;  %v789_v60 = vadd.f32 %v745_v57, %v568_v34  ;;  %v972_v0 = vsel %vm971_vm4, %v1887_v28, %v968_v52  ;;  %vm2879_vm8 = vmor %vm1289_vm2, %vm1290_vm5  ;;  %v2885_v28 = vpop.f32.mrf.mxu3 }
 0x204   :  { %v1288_v1 = vadd.f32 %v2825_v10, %v1287_v3  ;;  %1900 = vpow2.f32 %v1648_v53  ;;  %v633_v4 = vadd.f32 %v632_v20, %v2366_v30  ;;  %v977_v6 = vsel %vm2817_vm1, %v976_v36, %v972_v0 }
 0x205   :  { %v1521_v56 = vadd.f32 %v1505_v49, %v1489_v63  ;;  %v981_v37 = vsub.f32 1.0, %v980_v50  ;;  %v990_v27 = vand.u32 2147483648, %v2801_v17  ;;  %vm2870_vm6 = vcmp.eq.f32.partialorder %v1293_v42, 8.507059e+37 }
 0x206   :  { %v1426_v12 = vmul.f32 %v977_v6, %v738_v16  ;;  %vm984_vm7 = vweird.f32 %v2801_v17  ;;  %1902 = vpow2.f32 %v1664_v62  ;;  %vm985_vm9 = vweird.f32 %v2845_v26  ;;  %v771_v6 = vld [vmem:[%s3248_s3 + $0x40] sm:$0xff] }
 0x207   :  { %v1537_v13 = vmax.f32 %v1521_v56, 0.0  ;;  %v982_v24 = vmul.f32 %v2845_v26, %v981_v37  ;;  %v1649_v29 = vmul.f32 -1.442695, %v789_v60  ;;  %v1292_v22 = vsel %vm2879_vm8, %v2825_v10, %v1288_v1  ;;  %vm986_vm11 = vmor %vm984_vm7, %vm985_vm9  ;;  %v749_v60 = vld [vmem:[%s3247_s2 + $0x110] sm:$0xff] }
 0x208   :  { %v1899_v32 = vpop.eup %1898  ;;  %v1442_v31 = vadd.f32 %v1426_v12, %v2685_v54  ;;  %vm2891_vm10 = vcmp.eq.f32.partialorder %v988_v59, 8.507059e+37  ;;  %v1109_v35 = vadd.f32 %v746_v19, %v633_v4  ;;  %v991_v7 = vor.u32 1.1754944e-38, %v990_v27 }
 0x209   :  { %1553 = vst [vmem:[%s3249_s6 + $0x30] sm:$0xff] %v1537_v13  ;;  %v1300_v36 = vmul.f32 %v1899_v32, %v2840_v51  ;;  %v983_v38 = vadd.f32 %v2845_v26, %v982_v24  ;;  %1904 = vpow2.f32 %v1649_v29  ;;  %v1310_v10 = vand.u32 2147483648, %v2840_v51 }
 0x20a   :  { %v1901_v54 = vpop.eup %1900  ;;  %1906 = vtanh.f32 %v1442_v31  ;;  %v1665_v41 = vmul.f32 -1.442695, %v1109_v35  ;;  %v571_v42 = vadd.f32 %v570_v9, %v2360_v25  ;;  %v1297_v43 = vsel %vm2870_vm6, %v2837_v47, %v1292_v22 }
 0x20b   :  { %v1301_v44 = vsub.f32 1.0, %v1300_v36  ;;  %v987_v45 = vsel %vm986_vm11, %v2845_v26, %v983_v38  ;;  %v2916_v46 = vadd.f32 1.0, %v1901_v54  ;;  %vm1305_vm12 = vweird.f32 %v1899_v32  ;;  %v697_v63 = vpop.f32.mrf.mxu3  ;;  %v573_v36 = vpop.f32.mrf.mxu1 }
 0x20c   :  { %v1903_v14 = vpop.eup %1902  ;;  %v992_v15 = vsel %vm2891_vm10, %v991_v7, %v987_v45  ;;  %1908 = vpow2.f32 %v1665_v41  ;;  %v790_v17 = vadd.f32 %v748_v8, %v571_v42  ;;  %vm1304_vm13 = vweird.f32 %v2840_v51 }
 0x20d   :  { %v1302_v48 = vmul.f32 %v1899_v32, %v1301_v44  ;;  %v1427_v34 = vmul.f32 %v992_v15, %v741_v40  ;;  %1910 = vrcp.f32 %v2916_v46  ;;  %v2924_v47 = vadd.f32 1.0, %v1903_v14  ;;  %vm2931_vm14 = vmor %vm1304_vm13, %vm1305_vm12 }
 0x20e   :  { %v1308_v23 = vand.u32 2147483647, %v2840_v51  ;;  %v1650_v53 = vmul.f32 -1.442695, %v790_v17  ;;  %v1474_v26 = vsub.f32 1.0, %v1297_v43  ;;  %v1506_v59 = vmul.f32 %v1297_v43, %v770_v33  ;;  %v744_v33 = vld [vmem:[%s3247_s2 + $0xe8] sm:$0xff] }
 0x20f   :  { %v1905_v57 = vpop.eup %1904  ;;  %v1303_v58 = vadd.f32 %v1899_v32, %v1302_v48  ;;  %v1443_v18 = vadd.f32 %v1427_v34, %v2809_v2  ;;  %1912 = vrcp.f32 %v2924_v47  ;;  %v1311_v61 = vor.u32 1.1754944e-38, %v1310_v10  ;;  %v638_v10 = vpop.f32.mrf.mxu2 }
 0x210   :  { %v1907_v49 = vpop.eup %1906  ;;  %v1003_v3 = vand.u32 2147483647, %v2916_v46  ;;  %v636_v51 = vadd.f32 %v635_v39, %v2366_v30  ;;  %v2939_v2 = vadd.f32 1.0, %v1905_v57  ;;  %vm1309_vm15 = vcmp.eq.f32.partialorder %v1308_v23, 8.507059e+37 }
 0x211   :  { %v1490_v52 = vmul.f32 %v1907_v49, %v1474_v26  ;;  %v1307_v62 = vsel %vm2931_vm14, %v1899_v32, %v1303_v58  ;;  %1914 = vtanh.f32 %v1443_v18  ;;  %v1005_v50 = vand.u32 2147483648, %v2916_v46  ;;  %v751_v58 = vld [vmem:[%s3247_s2 + $0x120] sm:$0xff] }
 0x212   :  { %v1909_v16 = vpop.eup %1908  ;;  %1916 = vpow2.f32 %v1650_v53  ;;  %v1312_v4 = vsel %vm1309_vm15, %v1311_v61, %v1307_v62  ;;  %v1325_v56 = vand.u32 2147483648, %v2924_v47  ;;  %v2952_v37 = vadd.f32 %v2885_v28, %v2387_v55 }
 0x213   :  { %v1911_v0 = vpop.eup %1910  ;;  %v1522_v1 = vadd.f32 %v1506_v59, %v1490_v52  ;;  %1918 = vrcp.f32 %v2939_v2  ;;  %v2955_v19 = vadd.f32 1.0, %v1909_v16  ;;  %v2958_v11 = vadd.f32 %v697_v63, %v2387_v55  ;;  %v700_v48 = vpop.f32.mrf.mxu3 }
 0x214   :  { %v995_v27 = vmul.f32 %v1911_v0, %v2916_v46  ;;  %vm999_vm0 = vweird.f32 %v2916_v46  ;;  %vm2963_vm1 = vcmp.eq.f32.partialorder %v1003_v3, 8.507059e+37  ;;  %v1110_v24 = vadd.f32 %v749_v60, %v636_v51 }
 0x215   :  { %v2960_v12 = vpop.eup %1912  ;;  %v1538_v13 = vmax.f32 %v1522_v1, 0.0  ;;  %v1475_v29 = vsub.f32 1.0, %v1312_v4  ;;  %1920 = vrcp.f32 %v2955_v19  ;;  %v1507_v22 = vmul.f32 %v1312_v4, %v771_v6 }
 0x216   :  { %v1315_v28 = vmul.f32 %v2960_v12, %v2924_v47  ;;  %v996_v9 = vsub.f32 1.0, %v995_v27  ;;  %vm1319_vm2 = vweird.f32 %v2924_v47  ;;  %v1006_v31 = vor.u32 1.1754944e-38, %v1005_v50 }
 0x217   :  { %v1915_v32 = vpop.eup %1914  ;;  %1554 = vst [vmem:[%s3249_s6 + $0x38] sm:$0xff] %v1538_v13  ;;  %v1323_v5 = vand.u32 2147483647, %v2924_v47  ;;  %v2975_v35 = vor.u32 1.1754944e-38, %v1325_v56  ;;  %vm1000_vm3 = vweird.f32 %v1911_v0  ;;  %v1018_v41 = vand.u32 2147483647, %v2939_v2  ;;  %v641_v21 = vpop.f32.mrf.mxu2 }
 0x218   :  { %v1917_v38 = vpop.eup %1916  ;;  %v1491_v7 = vmul.f32 %v1915_v32, %v1475_v29  ;;  %v1316_v8 = vsub.f32 1.0, %v1315_v28  ;;  %v997_v54 = vmul.f32 %v1911_v0, %v996_v9  ;;  %v1020_v42 = vand.u32 2147483648, %v2939_v2  ;;  %vm1001_vm4 = vmor %vm999_vm0, %vm1000_vm3  ;;  %v747_v47 = vld [vmem:[%s3247_s2 + $0x100] sm:$0xff]  ;;  %v752_v13 = vld [vmem:[%s3247_s2 + $0x128] sm:$0xff] }
 0x219   :  { %v1919_v40 = vpop.eup %1918  ;;  %v2979_v43 = vadd.f32 1.0, %v1917_v38  ;;  %v1666_v44 = vmul.f32 -1.442695, %v1110_v24  ;;  %vm1320_vm5 = vweird.f32 %v2960_v12  ;;  %vm2989_vm6 = vcmp.eq.f32.partialorder %v1323_v5, 8.507059e+37  ;;  %v772_v5 = vld [vmem:[%s3248_s3 + $0x48] sm:$0xff] }
 0x21a   :  { %v1523_v45 = vadd.f32 %v1507_v22, %v1491_v7  ;;  %v1317_v14 = vmul.f32 %v2960_v12, %v1316_v8  ;;  %v998_v15 = vadd.f32 %v1911_v0, %v997_v54  ;;  %v1010_v17 = vmul.f32 %v1919_v40, %v2939_v2  ;;  %vm3020_vm11 = vmor %vm1319_vm2, %vm1320_vm5  ;;  %v754_v8 = vld [vmem:[%s3247_s2 + $0x138] sm:$0xff] }
 0x21b   :  { %v1340_v34 = vand.u32 2147483648, %v2955_v19  ;;  %1922 = vrcp.f32 %v2979_v43  ;;  %v574_v39 = vadd.f32 %v573_v36, %v2360_v25  ;;  %v2996_v23 = vpop.eup %1920  ;;  %v1338_v46 = vand.u32 2147483647, %v2955_v19 }
 0x21c   :  { %v1539_v53 = vmax.f32 %v1523_v45, 0.0  ;;  %v1002_v57 = vsel %vm1001_vm4, %v1911_v0, %v998_v15  ;;  %v1011_v26 = vsub.f32 1.0, %v1010_v17  ;;  %v1318_v49 = vadd.f32 %v2960_v12, %v1317_v14 }
 0x21d   :  { %v1007_v18 = vsel %vm2963_vm1, %v1006_v31, %v1002_v57  ;;  %v1330_v59 = vmul.f32 %v2996_v23, %v2955_v19  ;;  %1924 = vpow2.f32 %v1666_v44  ;;  %vm1014_vm7 = vweird.f32 %v2939_v2 }
 0x21e   :  { %1555 = vst [vmem:[%s3249_s6 + $0x40] sm:$0xff] %v1539_v53  ;;  %v1428_v20 = vmul.f32 %v1007_v18, %v744_v33  ;;  %v1012_v61 = vmul.f32 %v1919_v40, %v1011_v26  ;;  %vm1015_vm8 = vweird.f32 %v1919_v40  ;;  %vm1334_vm9 = vweird.f32 %v2955_v19  ;;  %v773_v18 = vld [vmem:[%s3248_s3 + $0x50] sm:$0xff] }
 0x21f   :  { %v1331_v3 = vsub.f32 1.0, %v1330_v59  ;;  %vm3012_vm10 = vcmp.eq.f32.partialorder %v1018_v41, 8.507059e+37  ;;  %v791_v52 = vadd.f32 %v751_v58, %v574_v39  ;;  %v1021_v50 = vor.u32 1.1754944e-38, %v1020_v42  ;;  %vm1016_vm12 = vmor %vm1014_vm7, %vm1015_vm8  ;;  %v755_v41 = vld [vmem:[%s3247_s2 + $0x140] sm:$0xff] }
 0x220   :  { %v1444_v63 = vadd.f32 %v1428_v20, %v2952_v37  ;;  %v1013_v16 = vadd.f32 %v1919_v40, %v1012_v61  ;;  %v1341_v60 = vor.u32 1.1754944e-38, %v1340_v34  ;;  %v1322_v1 = vsel %vm3020_vm11, %v2960_v12, %v1318_v49  ;;  %v576_v37 = vpop.f32.mrf.mxu1 }
 0x221   :  { %v3025_v0 = vpop.eup %1922  ;;  %v1332_v4 = vmul.f32 %v2996_v23, %v1331_v3  ;;  %vm3036_vm13 = vcmp.eq.f32.partialorder %v1338_v46, 8.507059e+37  ;;  %v1651_v6 = vmul.f32 -1.442695, %v791_v52  ;;  %vm1335_vm14 = vweird.f32 %v2996_v23 }
 0x222   :  { %1926 = vtanh.f32 %v1444_v63  ;;  %v1017_v27 = vsel %vm1016_vm12, %v1919_v40, %v1013_v16  ;;  %v1025_v12 = vmul.f32 %v3025_v0, %v2979_v43  ;;  %v639_v28 = vadd.f32 %v638_v10, %v2366_v30  ;;  %vm3068_vm15 = vmor %vm1334_vm9, %vm1335_vm14  ;;  %v757_v16 = vld [vmem:[%s3247_s2 + $0x150] sm:$0xff] }
 0x223   :  { %v1925_v2 = vpop.eup %1924  ;;  %v1022_v24 = vsel %vm3012_vm10, %v1021_v50, %v1017_v27  ;;  %v1333_v29 = vadd.f32 %v2996_v23, %v1332_v4  ;;  %1928 = vpow2.f32 %v1651_v6  ;;  %v1327_v9 = vsel %vm2989_vm6, %v2975_v35, %v1322_v1  ;;  %v644_v50 = vpop.f32.mrf.mxu2 }
 0x224   :  { %v1429_v32 = vmul.f32 %v1022_v24, %v747_v47  ;;  %v3053_v22 = vadd.f32 1.0, %v1925_v2  ;;  %v1026_v31 = vsub.f32 1.0, %v1025_v12  ;;  %v1035_v36 = vand.u32 2147483648, %v2979_v43 }
 0x225   :  { %v1111_v38 = vadd.f32 %v752_v13, %v639_v28  ;;  %v577_v7 = vadd.f32 %v576_v37, %v2360_v25  ;;  %v642_v54 = vadd.f32 %v641_v21, %v2366_v30  ;;  %vm1029_vm0 = vweird.f32 %v2979_v43 }
 0x226   :  { %v1445_v10 = vadd.f32 %v1429_v32, %v2958_v11  ;;  %1930 = vrcp.f32 %v3053_v22  ;;  %v1033_v40 = vand.u32 2147483647, %v2979_v43  ;;  %v1476_v42 = vsub.f32 1.0, %v1327_v9 }
 0x227   :  { %v1337_v19 = vsel %vm3068_vm15, %v2996_v23, %v1333_v29  ;;  %v1027_v44 = vmul.f32 %v3025_v0, %v1026_v31  ;;  %vm1030_vm1 = vweird.f32 %v3025_v0  ;;  %v1508_v45 = vmul.f32 %v1327_v9, %v772_v5  ;;  %v750_v23 = vld [vmem:[%s3247_s2 + $0x118] sm:$0xff] }
 0x228   :  { %v1927_v11 = vpop.eup %1926  ;;  %1932 = vtanh.f32 %v1445_v10  ;;  %v1667_v14 = vmul.f32 -1.442695, %v1111_v38  ;;  %v792_v15 = vadd.f32 %v754_v8, %v577_v7  ;;  %v1036_v39 = vor.u32 1.1754944e-38, %v1035_v36  ;;  %vm1031_vm2 = vmor %vm1029_vm0, %vm1030_vm1  ;;  %v579_v20 = vpop.f32.mrf.mxu1  ;;  %v758_v29 = vld [vmem:[%s3247_s2 + $0x158] sm:$0xff] }
 0x229   :  { %v1929_v17 = vpop.eup %1928  ;;  %v1492_v33 = vmul.f32 %v1927_v11, %v1476_v42  ;;  %v1028_v34 = vadd.f32 %v3025_v0, %v1027_v44  ;;  %v1112_v53 = vadd.f32 %v755_v41, %v642_v54  ;;  %v1342_v57 = vsel %vm3036_vm13, %v1341_v60, %v1337_v19  ;;  %v703_v11 = vpop.f32.mrf.mxu3 }
 0x22a   :  { %v3092_v26 = vadd.f32 1.0, %v1929_v17  ;;  %1934 = vpow2.f32 %v1667_v14  ;;  %v1652_v46 = vmul.f32 -1.442695, %v792_v15  ;;  %vm1034_vm3 = vcmp.eq.f32.partialorder %v1033_v40, 8.507059e+37 }
 0x22b   :  { %v1524_v58 = vadd.f32 %v1508_v45, %v1492_v33  ;;  %v1032_v49 = vsel %vm1031_vm2, %v3025_v0, %v1028_v34  ;;  %v1668_v59 = vmul.f32 -1.442695, %v1112_v53  ;;  %v701_v3 = vadd.f32 %v700_v48, %v2387_v55 }
 0x22c   :  { %v1931_v61 = vpop.eup %1930  ;;  %v1037_v51 = vsel %vm1034_vm3, %v1036_v39, %v1032_v49  ;;  %1936 = vrcp.f32 %v3092_v26  ;;  %v1477_v52 = vsub.f32 1.0, %v1342_v57  ;;  %v1509_v0 = vmul.f32 %v1342_v57, %v773_v18 }
 0x22d   :  { %v1540_v43 = vmax.f32 %v1524_v58, 0.0  ;;  %v1345_v62 = vmul.f32 %v1931_v61, %v3053_v22  ;;  %v1430_v63 = vmul.f32 %v1037_v51, %v750_v23  ;;  %v1355_v1 = vand.u32 2147483648, %v3053_v22  ;;  %v647_v58 = vpop.f32.mrf.mxu2 }
 0x22e   :  { %v1933_v60 = vpop.eup %1932  ;;  %1938 = vpow2.f32 %v1652_v46  ;;  %v580_v4 = vadd.f32 %v579_v20, %v2360_v25  ;;  %vm1350_vm4 = vweird.f32 %v1931_v61  ;;  %v1353_v27 = vand.u32 2147483647, %v3053_v22  ;;  %v760_v46 = vld [vmem:[%s3247_s2 + $0x168] sm:$0xff] }
 0x22f   :  { %1556 = vst [vmem:[%s3249_s6 + $0x48] sm:$0xff] %v1540_v43  ;;  %v1493_v47 = vmul.f32 %v1933_v60, %v1477_v52  ;;  %v1346_v56 = vsub.f32 1.0, %v1345_v62  ;;  %v1446_v6 = vadd.f32 %v1430_v63, %v701_v3  ;;  %1940 = vpow2.f32 %v1668_v59 }
 0x230   :  { %v1935_v37 = vpop.eup %1934  ;;  %v793_v12 = vadd.f32 %v757_v16, %v580_v4  ;;  %v645_v13 = vadd.f32 %v644_v50, %v2366_v30  ;;  %vm1349_vm5 = vweird.f32 %v3053_v22  ;;  %v1356_v36 = vor.u32 1.1754944e-38, %v1355_v1  ;;  %v774_v22 = vld [vmem:[%s3248_s3 + $0x58] sm:$0xff]  ;;  %v582_v42 = vpop.f32.mrf.mxu1 }
 0x231   :  { %v1525_v21 = vadd.f32 %v1509_v0, %v1493_v47  ;;  %v1347_v2 = vmul.f32 %v1931_v61, %v1346_v56  ;;  %1942 = vtanh.f32 %v1446_v6  ;;  %v3111_v24 = vadd.f32 1.0, %v1935_v37  ;;  %vm1351_vm6 = vmor %vm1349_vm5, %vm1350_vm4  ;;  %v761_v37 = vld [vmem:[%s3247_s2 + $0x170] sm:$0xff] }
 0x232   :  { %v1937_v28 = vpop.eup %1936  ;;  %v1653_v9 = vmul.f32 -1.442695, %v793_v12  ;;  %v1113_v7 = vadd.f32 %v758_v29, %v645_v13  ;;  %vm1354_vm7 = vcmp.eq.f32.partialorder %v1353_v27, 8.507059e+37  ;;  %v1048_v41 = vand.u32 2147483647, %v3092_v26 }
 0x233   :  { %v1541_v32 = vmax.f32 %v1525_v21, 0.0  ;;  %v1348_v31 = vadd.f32 %v1931_v61, %v1347_v2  ;;  %1944 = vrcp.f32 %v3111_v24  ;;  %v1040_v38 = vmul.f32 %v1937_v28, %v3092_v26 }
 0x234   :  { %v1939_v5 = vpop.eup %1938  ;;  %1946 = vpow2.f32 %v1653_v9  ;;  %v1050_v45 = vand.u32 2147483648, %v3092_v26  ;;  %vm1045_vm8 = vweird.f32 %v1937_v28  ;;  %v1669_v17 = vmul.f32 -1.442695, %v1113_v7 }
 0x235   :  { %v1941_v8 = vpop.eup %1940  ;;  %1557 = vst [vmem:[%s3249_s6 + $0x50] sm:$0xff] %v1541_v32  ;;  %v1352_v54 = vsel %vm1351_vm6, %v1931_v61, %v1348_v31  ;;  %v3123_v35 = vadd.f32 1.0, %v1939_v5  ;;  %v1041_v40 = vsub.f32 1.0, %v1040_v38  ;;  %v583_v39 = vadd.f32 %v582_v42, %v2360_v25  ;;  %v753_v25 = vld [vmem:[%s3247_s2 + $0x130] sm:$0xff] }
 0x236   :  { %v1357_v10 = vsel %vm1354_vm7, %v1356_v36, %v1352_v54  ;;  %v3131_v14 = vadd.f32 1.0, %v1941_v8  ;;  %v704_v57 = vadd.f32 %v703_v11, %v2387_v55  ;;  %vm1044_vm9 = vweird.f32 %v3092_v26 }
 0x237   :  { %v1943_v19 = vpop.eup %1942  ;;  %v1478_v44 = vsub.f32 1.0, %v1357_v10  ;;  %1948 = vrcp.f32 %v3123_v35  ;;  %v1042_v15 = vmul.f32 %v1937_v28, %v1041_v40  ;;  %v1510_v34 = vmul.f32 %v1357_v10, %v774_v22  ;;  %vm1046_vm10 = vmor %vm1044_vm9, %vm1045_vm8  ;;  %v756_v22 = vld [vmem:[%s3247_s2 + $0x148] sm:$0xff]  ;;  %v775_v40 = vld [vmem:[%s3248_s3 + $0x60] sm:$0xff] }
 0x238   :  { %1950 = vrcp.f32 %v3131_v14  ;;  %v1370_v59 = vand.u32 2147483648, %v3111_v24  ;;  %vm1049_vm11 = vcmp.eq.f32.partialorder %v1048_v41, 8.507059e+37  ;;  %v1051_v20 = vor.u32 1.1754944e-38, %v1050_v45 }
 0x239   :  { %v1945_v33 = vpop.eup %1944  ;;  %v1494_v48 = vmul.f32 %v1943_v19, %v1478_v44  ;;  %v1043_v23 = vadd.f32 %v1937_v28, %v1042_v15  ;;  %1952 = vpow2.f32 %v1669_v17  ;;  %v794_v62 = vadd.f32 %v760_v46, %v583_v39 }
 0x23a   :  { %v1360_v53 = vmul.f32 %v1945_v33, %v3111_v24  ;;  %v1947_v18 = vpop.eup %1946  ;;  %v648_v63 = vadd.f32 %v647_v58, %v2366_v30  ;;  %vm1365_vm12 = vweird.f32 %v1945_v33  ;;  %vm1364_vm13 = vweird.f32 %v3111_v24 }
 0x23b   :  { %v1526_v49 = vadd.f32 %v1510_v34, %v1494_v48  ;;  %v1047_v3 = vsel %vm1046_vm10, %v1937_v28, %v1043_v23  ;;  %v3146_v26 = vadd.f32 1.0, %v1947_v18  ;;  %v1368_v1 = vand.u32 2147483647, %v3111_v24  ;;  %vm3163_vm14 = vmor %vm1364_vm13, %vm1365_vm12  ;;  %v706_v28 = vpop.f32.mrf.mxu3 }
 0x23c   :  { %v1361_v61 = vsub.f32 1.0, %v1360_v53  ;;  %v1052_v52 = vsel %vm1049_vm11, %v1051_v20, %v1047_v3  ;;  %v1371_v4 = vor.u32 1.1754944e-38, %v1370_v59  ;;  %v1063_v12 = vand.u32 2147483647, %v3123_v35 }
 0x23d   :  { %v1949_v51 = vpop.eup %1948  ;;  %v1542_v43 = vmax.f32 %v1526_v49, 0.0  ;;  %v1431_v50 = vmul.f32 %v1052_v52, %v753_v25  ;;  %1954 = vrcp.f32 %v3146_v26  ;;  %v1065_v13 = vand.u32 2147483648, %v3123_v35 }
 0x23e   :  { %v1362_v16 = vmul.f32 %v1945_v33, %v1361_v61  ;;  %v1055_v60 = vmul.f32 %v1949_v51, %v3123_v35  ;;  %v3150_v0 = vpop.eup %1950  ;;  %vm1060_vm15 = vweird.f32 %v1949_v51  ;;  %v1654_v21 = vmul.f32 -1.442695, %v794_v62 }
 0x23f   :  { %1558 = vst [vmem:[%s3249_s6 + $0x58] sm:$0xff] %v1542_v43  ;;  %v1447_v30 = vadd.f32 %v1431_v50, %v704_v57  ;;  %v1375_v56 = vmul.f32 %v3150_v0, %v3131_v14  ;;  %v1953_v2 = vpop.eup %1952  ;;  %vm1369_vm0 = vcmp.eq.f32.partialorder %v1368_v1, 8.507059e+37  ;;  %v1114_v31 = vadd.f32 %v761_v37, %v648_v63  ;;  %v759_v43 = vld [vmem:[%s3247_s2 + $0x160] sm:$0xff]  ;;  %v776_v1 = vld [vmem:[%s3248_s3 + $0x68] sm:$0xff] }
 0x240   :  { %v1363_v47 = vadd.f32 %v1945_v33, %v1362_v16  ;;  %v1056_v6 = vsub.f32 1.0, %v1055_v60  ;;  %v3171_v32 = vadd.f32 1.0, %v1953_v2  ;;  %vm1059_vm1 = vweird.f32 %v3123_v35 }
 0x241   :  { %1956 = vtanh.f32 %v1447_v30  ;;  %v1376_v29 = vsub.f32 1.0, %v1375_v56  ;;  %v1385_v8 = vand.u32 2147483648, %v3131_v14  ;;  %v707_v54 = vadd.f32 %v706_v28, %v2387_v55  ;;  %vm1061_vm2 = vmor %vm1059_vm1, %vm1060_vm15 }
 0x242   :  { %v1367_v24 = vsel %vm3163_vm14, %v1945_v33, %v1363_v47  ;;  %v1057_v9 = vmul.f32 %v1949_v51, %v1056_v6  ;;  %1958 = vpow2.f32 %v1654_v21  ;;  %v1066_v10 = vor.u32 1.1754944e-38, %v1065_v13 }
 0x243   :  { %v1372_v5 = vsel %vm1369_vm0, %v1371_v4, %v1367_v24  ;;  %v1377_v36 = vmul.f32 %v3150_v0, %v1376_v29  ;;  %v1955_v7 = vpop.eup %1954  ;;  %1960 = vrcp.f32 %v3171_v32  ;;  %vm1064_vm3 = vcmp.eq.f32.partialorder %v1063_v12, 8.507059e+37  ;;  %v709_v61 = vpop.f32.mrf.mxu3 }
 0x244   :  { %v1058_v38 = vadd.f32 %v1949_v51, %v1057_v9  ;;  %vm1380_vm4 = vweird.f32 %v3150_v0  ;;  %v1070_v35 = vmul.f32 %v1955_v7, %v3146_v26  ;;  %v1479_v42 = vsub.f32 1.0, %v1372_v5 }
 0x245   :  { %v1378_v44 = vadd.f32 %v3150_v0, %v1377_v36  ;;  %v1670_v11 = vmul.f32 -1.442695, %v1114_v31  ;;  %vm1379_vm5 = vweird.f32 %v3131_v14  ;;  %v1383_v15 = vand.u32 2147483647, %v3131_v14 }
 0x246   :  { %v1062_v41 = vsel %vm1061_vm2, %v1949_v51, %v1058_v38  ;;  %v1071_v33 = vsub.f32 1.0, %v1070_v35  ;;  %v1511_v39 = vmul.f32 %v1372_v5, %v775_v40  ;;  %v1080_v53 = vand.u32 2147483648, %v3146_v26  ;;  %vm3193_vm6 = vmor %vm1379_vm5, %vm1380_vm4 }
 0x247   :  { %v1067_v19 = vsel %vm1064_vm3, %v1066_v10, %v1062_v41  ;;  %v1957_v45 = vpop.eup %1956  ;;  %1962 = vpow2.f32 %v1670_v11  ;;  %vm1075_vm7 = vweird.f32 %v1955_v7  ;;  %v1078_v58 = vand.u32 2147483647, %v3146_v26  ;;  %v762_v11 = vld [vmem:[%s3247_s2 + $0x178] sm:$0xff] }
 0x248   :  { %v1432_v17 = vmul.f32 %v1067_v19, %v756_v22  ;;  %v1959_v48 = vpop.eup %1958  ;;  %v1495_v34 = vmul.f32 %v1957_v45, %v1479_v42  ;;  %v1072_v46 = vmul.f32 %v1955_v7, %v1071_v33  ;;  %v1382_v49 = vsel %vm3193_vm6, %v3150_v0, %v1378_v44 }
 0x249   :  { %v1961_v14 = vpop.eup %1960  ;;  %v1386_v59 = vor.u32 1.1754944e-38, %v1385_v8  ;;  %v3201_v25 = vadd.f32 1.0, %v1959_v48  ;;  %vm1074_vm8 = vweird.f32 %v3146_v26  ;;  %vm1384_vm9 = vcmp.eq.f32.partialorder %v1383_v15, 8.507059e+37 }
 0x24a   :  { %v1448_v23 = vadd.f32 %v1432_v17, %v707_v54  ;;  %v1527_v18 = vadd.f32 %v1511_v39, %v1495_v34  ;;  %v1390_v20 = vmul.f32 %v1961_v14, %v3171_v32  ;;  %v1073_v3 = vadd.f32 %v1955_v7, %v1072_v46  ;;  %vm1076_vm10 = vmor %vm1074_vm8, %vm1075_vm7 }
 0x24b   :  { %v1081_v52 = vor.u32 1.1754944e-38, %v1080_v53  ;;  %v1387_v62 = vsel %vm1384_vm9, %v1386_v59, %v1382_v49  ;;  %vm1079_vm11 = vcmp.eq.f32.partialorder %v1078_v58, 8.507059e+37  ;;  %v1400_v26 = vand.u32 2147483648, %v3171_v32  ;;  %v712_v44 = vpop.f32.mrf.mxu3 }
 0x24c   :  { %1964 = vtanh.f32 %v1448_v23  ;;  %v1543_v51 = vmax.f32 %v1527_v18, 0.0  ;;  %v1391_v63 = vsub.f32 1.0, %v1390_v20  ;;  %v1077_v16 = vsel %vm1076_vm10, %v1955_v7, %v1073_v3  ;;  %v777_v7 = vld [vmem:[%s3248_s3 + $0x70] sm:$0xff] }
 0x24d   :  { %1966 = vrcp.f32 %v3201_v25  ;;  %v1963_v50 = vpop.eup %1962  ;;  %v710_v60 = vadd.f32 %v709_v61, %v2387_v55  ;;  %v1082_v0 = vsel %vm1079_vm11, %v1081_v52, %v1077_v16  ;;  %vm1395_vm12 = vweird.f32 %v1961_v14 }
 0x24e   :  { %1559 = vst [vmem:[%s3249_s6 + $0x60] sm:$0xff] %v1543_v51  ;;  %v1392_v4 = vmul.f32 %v1961_v14, %v1391_v63  ;;  %v1433_v47 = vmul.f32 %v1082_v0, %v759_v43  ;;  %v1178_v30 = vadd.f32 1.0, %v1963_v50  ;;  %v1480_v56 = vsub.f32 1.0, %v1387_v62 }
 0x24f   :  { %v1398_v6 = vand.u32 2147483647, %v3171_v32  ;;  %vm1394_vm13 = vweird.f32 %v3171_v32  ;;  %v1512_v2 = vmul.f32 %v1387_v62, %v776_v1  ;;  %v1401_v29 = vor.u32 1.1754944e-38, %v1400_v26 }
 0x250   :  { %v1393_v27 = vadd.f32 %v1961_v14, %v1392_v4  ;;  %v1449_v12 = vadd.f32 %v1433_v47, %v710_v60  ;;  %1968 = vrcp.f32 %v1178_v30  ;;  %vm1396_vm14 = vmor %vm1394_vm13, %vm1395_vm12  ;;  %v1095_v38 = vand.u32 2147483648, %v3201_v25 }
 0x251   :  { %vm1399_vm15 = vcmp.eq.f32.partialorder %v1398_v6, 8.507059e+37  ;;  %v1093_v54 = vand.u32 2147483647, %v3201_v25  ;;  %vm1089_vm1 = vweird.f32 %v3201_v25  ;;  %v1415_v34 = vand.u32 2147483648, %v1178_v30 }
 0x252   :  { %v1965_v37 = vpop.eup %1964  ;;  %v1397_v24 = vsel %vm1396_vm14, %v1961_v14, %v1393_v27  ;;  %1970 = vtanh.f32 %v1449_v12  ;;  %v1096_v45 = vor.u32 1.1754944e-38, %v1095_v38  ;;  %v713_v39 = vadd.f32 %v712_v44, %v2387_v55  ;;  %v778_v55 = vld [vmem:[%s3248_s3 + $0x78] sm:$0xff] }
 0x253   :  { %v1967_v13 = vpop.eup %1966  ;;  %v1496_v21 = vmul.f32 %v1965_v37, %v1480_v56  ;;  %v1402_v31 = vsel %vm1399_vm15, %v1401_v29, %v1397_v24  ;;  %vm1094_vm3 = vcmp.eq.f32.partialorder %v1093_v54, 8.507059e+37  ;;  %vm1409_vm5 = vweird.f32 %v1178_v30 }
 0x254   :  { %v1085_v28 = vmul.f32 %v1967_v13, %v3201_v25  ;;  %vm1090_vm0 = vweird.f32 %v1967_v13  ;;  %v1481_v22 = vsub.f32 1.0, %v1402_v31  ;;  %v1513_v42 = vmul.f32 %v1402_v31, %v777_v7 }
 0x255   :  { %v1528_v9 = vadd.f32 %v1512_v2, %v1496_v21  ;;  %vm1091_vm2 = vmor %vm1089_vm1, %vm1090_vm0  ;;  %v1413_v46 = vand.u32 2147483647, %v1178_v30  ;;  %v1416_v18 = vor.u32 1.1754944e-38, %v1415_v34 }
 0x256   :  { %v1086_v5 = vsub.f32 1.0, %v1085_v28  ;;  %v1969_v32 = vpop.eup %1968 }
 0x257   :  { %v1544_v36 = vmax.f32 %v1528_v9, 0.0  ;;  %v1405_v10 = vmul.f32 %v1969_v32, %v1178_v30  ;;  %vm1410_vm4 = vweird.f32 %v1969_v32  ;;  %vm1414_vm7 = vcmp.eq.f32.partialorder %v1413_v46, 8.507059e+37 }
 0x258   :  { %v1087_v8 = vmul.f32 %v1967_v13, %v1086_v5  ;;  %v1971_v40 = vpop.eup %1970  ;;  %vm1411_vm6 = vmor %vm1409_vm5, %vm1410_vm4 }
 0x259   :  { %1560 = vst [vmem:[%s3249_s6 + $0x68] sm:$0xff] %v1544_v36  ;;  %v1497_v35 = vmul.f32 %v1971_v40, %v1481_v22  ;;  %v1406_v19 = vsub.f32 1.0, %v1405_v10 }
 0x25a   :  { %v1088_v41 = vadd.f32 %v1967_v13, %v1087_v8 }
 0x25b   :  { %v1529_v17 = vadd.f32 %v1513_v42, %v1497_v35  ;;  %v1407_v33 = vmul.f32 %v1969_v32, %v1406_v19 }
 0x25c   :  { %v1092_v15 = vsel %vm1091_vm2, %v1967_v13, %v1088_v41 }
 0x25d   :  { %v1097_v48 = vsel %vm1094_vm3, %v1096_v45, %v1092_v15  ;;  %v1545_v57 = vmax.f32 %v1529_v17, 0.0  ;;  %v1408_v23 = vadd.f32 %v1969_v32, %v1407_v33 }
 0x25e   :  { %v1434_v53 = vmul.f32 %v1097_v48, %v762_v11 }
 0x25f   :  { %1561 = vst [vmem:[%s3249_s6 + $0x70] sm:$0xff] %v1545_v57  ;;  %v1412_v14 = vsel %vm1411_vm6, %v1969_v32, %v1408_v23 }
 0x260   :  { %v1450_v58 = vadd.f32 %v1434_v53, %v713_v39  ;;  %v1417_v49 = vsel %vm1414_vm7, %v1416_v18, %v1412_v14 }
 0x261   :  { %v1482_v59 = vsub.f32 1.0, %v1417_v49  ;;  %v1514_v61 = vmul.f32 %v1417_v49, %v778_v55 }
 0x262   :  { %1972 = vtanh.f32 %v1450_v58 }
 0x268   :  { %v1973_v25 = vpop.eup %1972 }
 0x269   :  { %v1498_v20 = vmul.f32 %v1973_v25, %v1482_v59 }
 0x26b   :  { %v1530_v3 = vadd.f32 %v1514_v61, %v1498_v20 }
 0x26d   :  { %v1546_v51 = vmax.f32 %v1530_v3, 0.0 }
 0x26f   :  { %1562 = vst [vmem:[%s3249_s6 + $0x78] sm:$0xff] %v1546_v51 }

</bundles_post_ra>
